<compile_context>
chip_gen: v7x
topology: tpu7x:2x2x1
jax: 0.10.0
libtpu: 0.0.40
codegen_flags: <defaults>
</compile_context>

<pallas_src>
import jax
import jax.numpy as jnp
from jax.experimental import pallas as pl
from jax.experimental.pallas import tpu as pltpu

# ---------------- scaled-down camembert-base config ----------------
VOCAB = 1000
HIDDEN = 128          # camembert-base uses 768; scaled down, classifier maps HIDDEN->3
N_LAYERS = 2          # camembert-base uses 12
N_HEADS = 4
HEAD_DIM = HIDDEN // N_HEADS
INTERMEDIATE = 512
MAX_POS = 64
NUM_CLASSES = 3
LN_EPS = 1e-5
PAD_IDX = 1           # RoBERTa padding_idx

BATCH = 2
SEQ = 16
BS = BATCH * SEQ      # flattened (batch*seq) rows fed to the MXU


# ---------------------------- shared math (traced inside kernels) ----------------------------

def _ln_f32(x, g, b, eps=LN_EPS):
    """Row-wise LayerNorm over the last (hidden) axis, f32 statistics."""
    mu = jnp.mean(x, axis=-1, keepdims=True)
    xc = x - mu
    var = jnp.mean(xc * xc, axis=-1, keepdims=True)
    return (xc * jax.lax.rsqrt(var + eps)) * g + b


def _gelu_erf(x):
    """Exact (erf) GELU, as in HF Roberta, in f32."""
    return 0.5 * x * (1.0 + jax.lax.erf(x * (1.0 / 2.0 ** 0.5)))


# ---------------------------- fused encoder-stack kernel ----------------------------

def _encoder_stack_kernel(x_ref, mask_ref,
                          wqkv_ref, bqkv_ref, wo_ref, bo_ref,
                          ln1g_ref, ln1b_ref,
                          w1_ref, b1_ref, w2_ref, b2_ref,
                          ln2g_ref, ln2b_ref,
                          o_ref, ctx_ref):
    """Grid = (N_LAYERS,).  o_ref is the VMEM-resident activation (B*S, H)."""
    layer = pl.program_id(0)

    # Seed the resident activation with the (embedding-LN'd) input on layer 0.
    @pl.when(layer == 0)
    def _():
        o_ref[...] = x_ref[...]

    x = o_ref[...].astype(jnp.float32)                     # (BS, H)
    mask = mask_ref[...]                                   # (BS, BS) additive mask

    # ---- fused QKV projection: one bf16 MXU matmul, lane-dense N = 3*H ----
    x16 = x.astype(jnp.bfloat16)
    qkv = jnp.dot(x16, wqkv_ref[0],
                  preferred_element_type=jnp.float32) + bqkv_ref[0]   # (BS, 3H)

    scale = 1.0 / float(HEAD_DIM) ** 0.5

    # ---- per-head attention, batch-stacked scores (cross-batch blocks masked) ----
    for h in range(N_HEADS):
        lo = h * HEAD_DIM
        q_h = qkv[:, lo:lo + HEAD_DIM]                     # (BS, Dh)
        k_h = qkv[:, HIDDEN + lo:HIDDEN + lo + HEAD_DIM]   # (BS, Dh)
        v_h = qkv[:, 2 * HIDDEN + lo:2 * HIDDEN + lo + HEAD_DIM]

        # q k^T via dot_general contracting the last axes (no k.T materialized)
        s = jax.lax.dot_general(q_h, k_h, (((1,), (1,)), ((), ())),
                                preferred_element_type=jnp.float32)   # (BS, BS)
        s = s * scale + mask
        m = jnp.max(s, axis=-1, keepdims=True)
        p = jnp.exp(s - m)
        p = p * pl.reciprocal(jnp.sum(p, axis=-1, keepdims=True), approx=True)

        # lane-contiguous head slot in the (BS, H) ctx scratch
        ctx_ref[:, lo:lo + HEAD_DIM] = jnp.dot(p, v_h,
                                               preferred_element_type=jnp.float32)

    # ---- single K=128 output projection + bias + residual + LayerNorm ----
    attn = (jnp.dot(ctx_ref[...].astype(jnp.bfloat16), wo_ref[0],
                    preferred_element_type=jnp.float32)
            + bo_ref[0] + x)
    x1 = _ln_f32(attn, ln1g_ref[0], ln1b_ref[0])           # (BS, H)

    # ---- FFN: w1 + GELU, then w2 + bias + residual + LayerNorm ----
    h1 = jnp.dot(x1.astype(jnp.bfloat16), w1_ref[0],
                 preferred_element_type=jnp.float32) + b1_ref[0]
    h1 = _gelu_erf(h1)
    h2 = jnp.dot(h1.astype(jnp.bfloat16), w2_ref[0],
                 preferred_element_type=jnp.float32) + b2_ref[0]
    o_ref[...] = _ln_f32(h2 + x1, ln2g_ref[0], ln2b_ref[0]).astype(o_ref.dtype)


def encoder_stack(x_flat, mask_full, enc):
    """x_flat: (B*S, H) f32; mask_full: (B*S, B*S) f32 additive; enc: stacked weights."""

    def w_spec(arr):
        rest = arr.shape[1:]
        return pl.BlockSpec((1,) + rest, lambda l, n=len(rest): (l,) + (0,) * n)

    weights = (enc["wqkv"], enc["bqkv"], enc["wo"], enc["bo"],
               enc["ln1_g"], enc["ln1_b"],
               enc["w1"], enc["b1"], enc["w2"], enc["b2"],
               enc["ln2_g"], enc["ln2_b"])

    return pl.pallas_call(
        _encoder_stack_kernel,
        grid=(N_LAYERS,),
        in_specs=[pl.BlockSpec((BS, HIDDEN), lambda l: (0, 0)),   # activations (resident)
                  pl.BlockSpec((BS, BS), lambda l: (0, 0))]       # combined mask
                 + [w_spec(w) for w in weights],                  # per-layer weight slabs
        out_specs=pl.BlockSpec((BS, HIDDEN), lambda l: (0, 0)),   # resident accumulator
        out_shape=jax.ShapeDtypeStruct((BS, HIDDEN), jnp.float32),
        scratch_shapes=[pltpu.VMEM((BS, HIDDEN), jnp.float32)],   # per-head ctx slab
        compiler_params=pltpu.CompilerParams(
            dimension_semantics=("arbitrary",)),                  # layers are sequential
    )(x_flat, mask_full, *weights)


# ---------------------------- parameters ----------------------------

def init_params(key):
    keys = iter(jax.random.split(key, 64))

    def nrm(shape):
        return 0.02 * jax.random.normal(next(keys), shape, jnp.float32)

    p = {}
    p["word_emb"] = nrm((VOCAB, HIDDEN)).at[PAD_IDX].set(0.0)
    p["pos_emb"] = nrm((MAX_POS, HIDDEN)).at[PAD_IDX].set(0.0)
    p["tok_emb"] = nrm((1, HIDDEN))                      # type_vocab_size = 1
    p["emb_ln_g"] = jnp.ones((HIDDEN,), jnp.float32)
    p["emb_ln_b"] = jnp.zeros((HIDDEN,), jnp.float32)

    per = {k: [] for k in ("wqkv", "bqkv", "wo", "bo", "ln1_g", "ln1_b",
                           "w1", "b1", "w2", "b2", "ln2_g", "ln2_b")}
    for _ in range(N_LAYERS):
        wq, wk, wv = nrm((HIDDEN, HIDDEN)), nrm((HIDDEN, HIDDEN)), nrm((HIDDEN, HIDDEN))
        per["wqkv"].append(jnp.concatenate([wq, wk, wv], axis=1))
        per["bqkv"].append(jnp.zeros((1, 3 * HIDDEN), jnp.float32))
        per["wo"].append(nrm((HIDDEN, HIDDEN)))
        per["bo"].append(jnp.zeros((1, HIDDEN), jnp.float32))
        per["ln1_g"].append(jnp.ones((1, HIDDEN), jnp.float32))
        per["ln1_b"].append(jnp.zeros((1, HIDDEN), jnp.float32))
        per["w1"].append(nrm((HIDDEN, INTERMEDIATE)))
        per["b1"].append(jnp.zeros((1, INTERMEDIATE), jnp.float32))
        per["w2"].append(nrm((INTERMEDIATE, HIDDEN)))
        per["b2"].append(jnp.zeros((1, HIDDEN), jnp.float32))
        per["ln2_g"].append(jnp.ones((1, HIDDEN), jnp.float32))
        per["ln2_b"].append(jnp.zeros((1, HIDDEN), jnp.float32))

    bf16_keys = {"wqkv", "wo", "w1", "w2"}   # matmul weights bf16 for the MXU
    p["enc"] = {k: jnp.stack(v).astype(jnp.bfloat16 if k in bf16_keys else jnp.float32)
                for k, v in per.items()}

    p["pooler_w"] = nrm((HIDDEN, HIDDEN))
    p["pooler_b"] = jnp.zeros((HIDDEN,), jnp.float32)
    p["cls_w"] = nrm((HIDDEN, NUM_CLASSES))
    p["cls_b"] = jnp.zeros((NUM_CLASSES,), jnp.float32)
    return p


# ---------------------------- forward pass ----------------------------

def camembert_classifier_forward(params, input_ids, attention_mask, labels=None):
    B, S = input_ids.shape

    # RoBERTa-style position ids (padding_idx = 1)
    pmask = (input_ids != PAD_IDX).astype(jnp.int32)
    position_ids = jnp.cumsum(pmask, axis=1) * pmask + PAD_IDX

    # Embedding gathers + embedding LayerNorm: plain-JAX glue.
    # TODO(synk): table gathers left to XLA; a pl.Element-gather kernel buys
    #             nothing at these sizes, and a (32,128) LN is one vreg-pair
    #             of work -- cheaper than a pallas_call dispatch.
    h = (params["word_emb"][input_ids]
         + params["pos_emb"][position_ids]
         + params["tok_emb"][jnp.zeros_like(input_ids)])
    x = _ln_f32(h.reshape(B * S, HIDDEN).astype(jnp.float32),
                params["emb_ln_g"], params["emb_ln_b"])
    # nn.Dropout(0.1) -> identity at inference.

    # Combined additive mask for batch-stacked attention:
    #   pad columns get -1e9, and cross-batch blocks get -1e9 so the single
    #   (B*S, B*S) score matrix is effectively block-diagonal per batch.
    am = attention_mask.astype(jnp.float32)                                   # (B, S)
    same_batch = (jnp.arange(B)[:, None] == jnp.arange(B)[None, :]).astype(jnp.float32)
    keep = same_batch[:, None, :, None] * am[None, None, :, :]                # (B,1,B,S)
    mask_full = jnp.broadcast_to(jnp.where(keep > 0.5, 0.0, -1e9),
                                 (B, S, B, S)).reshape(B * S, B * S).astype(jnp.float32)

    # One fused Pallas kernel for the whole encoder stack.
    x = encoder_stack(x, mask_full, params["enc"])                            # (B*S, H)
    x = x.reshape(B, S, HIDDEN)

    # RobertaPooler: tanh(Linear(h[:, 0])) -> outputs[1]; classifier Linear(H,3).
    # Plain jnp: M=2 / N=3 is lane-sparse, a pallas_call costs more than the math.
    pooled = jnp.tanh(x[:, 0, :] @ params["pooler_w"] + params["pooler_b"])
    logits = pooled @ params["cls_w"] + params["cls_b"]

    if labels is not None:
        logp = jax.nn.log_softmax(logits, axis=-1)
        loss = -jnp.mean(jnp.take_along_axis(logp, labels[:, None], axis=1))
        return (loss, logits)
    return (logits,)


# ---------------------------- driver ----------------------------

if __name__ == "__main__":
    key = jax.random.PRNGKey(0)
    k_param, k_ids, k_lab = jax.random.split(key, 3)

    params = init_params(k_param)
    input_ids = jax.random.randint(k_ids, (BATCH, SEQ), 2, VOCAB, dtype=jnp.int32)
    attention_mask = jnp.ones((BATCH, SEQ), dtype=jnp.int32)
    labels = jax.random.randint(k_lab, (BATCH,), 0, NUM_CLASSES, dtype=jnp.int32)

    fwd = jax.jit(camembert_classifier_forward)
    (logits,) = fwd(params, input_ids, attention_mask)
    jax.block_until_ready(logits)
    assert logits.shape == (BATCH, NUM_CLASSES)

    loss, logits2 = jax.jit(camembert_classifier_forward)(
        params, input_ids, attention_mask, labels)
    jax.block_until_ready((loss, logits2))
    assert logits2.shape == (BATCH, NUM_CLASSES) and loss.shape == ()

    print("KERNEL_OK")
</pallas_src>

<mosaic_0001>
module attributes {stable_mosaic.version = 11 : i64} {
  func.func @_encoder_stack_kernel(%arg0: i32, %arg1: memref<32x128xf32, #tpu.memory_space<vmem>>, %arg2: memref<32x32xf32, #tpu.memory_space<vmem>>, %arg3: memref<1x128x384xbf16, #tpu.memory_space<vmem>>, %arg4: memref<1x1x384xf32, #tpu.memory_space<vmem>>, %arg5: memref<1x128x128xbf16, #tpu.memory_space<vmem>>, %arg6: memref<1x1x128xf32, #tpu.memory_space<vmem>>, %arg7: memref<1x1x128xf32, #tpu.memory_space<vmem>>, %arg8: memref<1x1x128xf32, #tpu.memory_space<vmem>>, %arg9: memref<1x128x512xbf16, #tpu.memory_space<vmem>>, %arg10: memref<1x1x512xf32, #tpu.memory_space<vmem>>, %arg11: memref<1x512x128xbf16, #tpu.memory_space<vmem>>, %arg12: memref<1x1x128xf32, #tpu.memory_space<vmem>>, %arg13: memref<1x1x128xf32, #tpu.memory_space<vmem>>, %arg14: memref<1x1x128xf32, #tpu.memory_space<vmem>>, %arg15: memref<32x128xf32, #tpu.memory_space<vmem>>, %arg16: memref<32x128xf32, #tpu.memory_space<vmem>>) attributes {dimension_semantics = [#tpu.dimension_semantics<arbitrary>], iteration_bounds = array<i64: 2>, scalar_prefetch = 0 : i64, scratch_operands = 1 : i64, tpu.core_type = #tpu.core_type<tc>, window_params = [{pipeline_mode = #tpu.pipeline_mode<synchronous>, transform_indices = @transform_0, window_bounds = array<i64: 32, 128>}, {pipeline_mode = #tpu.pipeline_mode<synchronous>, transform_indices = @transform_1, window_bounds = array<i64: 32, 32>}, {transform_indices = @transform_2, window_bounds = array<i64: 1, 128, 384>}, {transform_indices = @transform_3, window_bounds = array<i64: 1, 1, 384>}, {transform_indices = @transform_4, window_bounds = array<i64: 1, 128, 128>}, {transform_indices = @transform_5, window_bounds = array<i64: 1, 1, 128>}, {transform_indices = @transform_6, window_bounds = array<i64: 1, 1, 128>}, {transform_indices = @transform_7, window_bounds = array<i64: 1, 1, 128>}, {transform_indices = @transform_8, window_bounds = array<i64: 1, 128, 512>}, {transform_indices = @transform_9, window_bounds = array<i64: 1, 1, 512>}, {transform_indices = @transform_10, window_bounds = array<i64: 1, 512, 128>}, {transform_indices = @transform_11, window_bounds = array<i64: 1, 1, 128>}, {transform_indices = @transform_12, window_bounds = array<i64: 1, 1, 128>}, {transform_indices = @transform_13, window_bounds = array<i64: 1, 1, 128>}, {pipeline_mode = #tpu.pipeline_mode<synchronous>, transform_indices = @transform_14, window_bounds = array<i64: 32, 128>}]} {
    %c0_i32 = arith.constant 0 : i32
    %0 = arith.cmpi eq, %arg0, %c0_i32 : i32
    %1 = arith.extui %0 : i1 to i32
    %c0_i32_0 = arith.constant 0 : i32
    %2 = arith.cmpi ne, %1, %c0_i32_0 : i32
    scf.if %2 {
      %c0_85 = arith.constant 0 : index
      %c0_86 = arith.constant 0 : index
      %173 = vector.load %arg1[%c0_85, %c0_86] : memref<32x128xf32, #tpu.memory_space<vmem>>, vector<32x128xf32>
      %c0_87 = arith.constant 0 : index
      %c0_88 = arith.constant 0 : index
      %174 = vector.load %arg15[%c0_87, %c0_88] : memref<32x128xf32, #tpu.memory_space<vmem>>, vector<32x128xf32>
      tpu.vector_store %arg15[%c0_87, %c0_88], %173 {strides = array<i32>} : memref<32x128xf32, #tpu.memory_space<vmem>>, vector<32x128xf32>,
    } else {
    }
    %c0 = arith.constant 0 : index
    %c0_1 = arith.constant 0 : index
    %3 = vector.load %arg15[%c0, %c0_1] : memref<32x128xf32, #tpu.memory_space<vmem>>, vector<32x128xf32>
    %c0_2 = arith.constant 0 : index
    %c0_3 = arith.constant 0 : index
    %4 = vector.load %arg2[%c0_2, %c0_3] : memref<32x32xf32, #tpu.memory_space<vmem>>, vector<32x32xf32>
    %5 = arith.truncf %3 : vector<32x128xf32> to vector<32x128xbf16>
    %c0_4 = arith.constant 0 : index
    %c0_5 = arith.constant 0 : index
    %c0_6 = arith.constant 0 : index
    %6 = vector.load %arg3[%c0_4, %c0_5, %c0_6] : memref<1x128x384xbf16, #tpu.memory_space<vmem>>, vector<1x128x384xbf16>
    %7 = vector.shape_cast %6 : vector<1x128x384xbf16> to vector<128x384xbf16>
    %cst = arith.constant dense<0.000000e+00> : vector<32x384xf32>
    %8 = tpu.matmul %5, %7, %cst {dimension_numbers = #tpu.dot_dimension_numbers<[1], [0], [0], [1], [0, 0, 1, 1], [], []>} : vector<32x128xbf16>, vector<128x384xbf16>, vector<32x384xf32> -> vector<32x384xf32>
    %c0_7 = arith.constant 0 : index
    %c0_8 = arith.constant 0 : index
    %c0_9 = arith.constant 0 : index
    %9 = vector.load %arg4[%c0_7, %c0_8, %c0_9] : memref<1x1x384xf32, #tpu.memory_space<vmem>>, vector<1x1x384xf32>
    %10 = vector.shape_cast %9 : vector<1x1x384xf32> to vector<1x384xf32>
    %11 = vector.broadcast %10 : vector<1x384xf32> to vector<32x384xf32>
    %12 = arith.addf %8, %11 : vector<32x384xf32>
    %13 = vector.extract_strided_slice %12 {offsets = [0, 0], sizes = [32, 32], strides = [1, 1]} : vector<32x384xf32> to vector<32x32xf32>
    %14 = vector.extract_strided_slice %12 {offsets = [0, 128], sizes = [32, 32], strides = [1, 1]} : vector<32x384xf32> to vector<32x32xf32>
    %15 = vector.extract_strided_slice %12 {offsets = [0, 256], sizes = [32, 32], strides = [1, 1]} : vector<32x384xf32> to vector<32x32xf32>
    %cst_10 = arith.constant dense<0.000000e+00> : vector<32x32xf32>
    %16 = tpu.matmul %13, %14, %cst_10 {dimension_numbers = #tpu.dot_dimension_numbers<[1], [1], [0], [0], [0, 0, 1, 0], [], []>} : vector<32x32xf32>, vector<32x32xf32>, vector<32x32xf32> -> vector<32x32xf32>
    %cst_11 = arith.constant 0.176776692 : f32
    %17 = vector.broadcast %cst_11 : f32 to vector<32x32xf32>
    %18 = arith.mulf %16, %17 : vector<32x32xf32>
    %19 = arith.addf %18, %4 : vector<32x32xf32>
    %cst_12 = arith.constant dense<0xFF800000> : vector<32xf32>
    %20 = vector.multi_reduction <maximumf>, %19, %cst_12 [1] : vector<32x32xf32> to vector<32xf32>
    %21 = vector.shape_cast %20 : vector<32xf32> to vector<32x1xf32>
    %22 = vector.broadcast %21 : vector<32x1xf32> to vector<32x32xf32>
    %23 = arith.subf %19, %22 : vector<32x32xf32>
    %24 = math.exp %23 : vector<32x32xf32>
    %cst_13 = arith.constant dense<0.000000e+00> : vector<32xf32>
    %25 = vector.multi_reduction <add>, %24, %cst_13 [1] : vector<32x32xf32> to vector<32xf32>
    %26 = vector.shape_cast %25 : vector<32xf32> to vector<32x1xf32>
    %27 = tpu.reciprocal %26 {approx = true} : vector<32x1xf32> -> vector<32x1xf32>
    %28 = vector.broadcast %27 : vector<32x1xf32> to vector<32x32xf32>
    %29 = arith.mulf %24, %28 : vector<32x32xf32>
    %cst_14 = arith.constant dense<0.000000e+00> : vector<32x32xf32>
    %30 = tpu.matmul %29, %15, %cst_14 {dimension_numbers = #tpu.dot_dimension_numbers<[1], [0], [0], [1], [0, 0, 1, 1], [], []>} : vector<32x32xf32>, vector<32x32xf32>, vector<32x32xf32> -> vector<32x32xf32>
    %c0_15 = arith.constant 0 : index
    %c0_16 = arith.constant 0 : index
    %31 = vector.load %arg16[%c0_15, %c0_16] : memref<32x128xf32, #tpu.memory_space<vmem>>, vector<32x32xf32>
    tpu.vector_store %arg16[%c0_15, %c0_16], %30 {strides = array<i32>} : memref<32x128xf32, #tpu.memory_space<vmem>>, vector<32x32xf32>,
    %32 = vector.extract_strided_slice %12 {offsets = [0, 32], sizes = [32, 32], strides = [1, 1]} : vector<32x384xf32> to vector<32x32xf32>
    %33 = vector.extract_strided_slice %12 {offsets = [0, 160], sizes = [32, 32], strides = [1, 1]} : vector<32x384xf32> to vector<32x32xf32>
    %34 = vector.extract_strided_slice %12 {offsets = [0, 288], sizes = [32, 32], strides = [1, 1]} : vector<32x384xf32> to vector<32x32xf32>
    %cst_17 = arith.constant dense<0.000000e+00> : vector<32x32xf32>
    %35 = tpu.matmul %32, %33, %cst_17 {dimension_numbers = #tpu.dot_dimension_numbers<[1], [1], [0], [0], [0, 0, 1, 0], [], []>} : vector<32x32xf32>, vector<32x32xf32>, vector<32x32xf32> -> vector<32x32xf32>
    %cst_18 = arith.constant 0.176776692 : f32
    %36 = vector.broadcast %cst_18 : f32 to vector<32x32xf32>
    %37 = arith.mulf %35, %36 : vector<32x32xf32>
    %38 = arith.addf %37, %4 : vector<32x32xf32>
    %cst_19 = arith.constant dense<0xFF800000> : vector<32xf32>
    %39 = vector.multi_reduction <maximumf>, %38, %cst_19 [1] : vector<32x32xf32> to vector<32xf32>
    %40 = vector.shape_cast %39 : vector<32xf32> to vector<32x1xf32>
    %41 = vector.broadcast %40 : vector<32x1xf32> to vector<32x32xf32>
    %42 = arith.subf %38, %41 : vector<32x32xf32>
    %43 = math.exp %42 : vector<32x32xf32>
    %cst_20 = arith.constant dense<0.000000e+00> : vector<32xf32>
    %44 = vector.multi_reduction <add>, %43, %cst_20 [1] : vector<32x32xf32> to vector<32xf32>
    %45 = vector.shape_cast %44 : vector<32xf32> to vector<32x1xf32>
    %46 = tpu.reciprocal %45 {approx = true} : vector<32x1xf32> -> vector<32x1xf32>
    %47 = vector.broadcast %46 : vector<32x1xf32> to vector<32x32xf32>
    %48 = arith.mulf %43, %47 : vector<32x32xf32>
    %cst_21 = arith.constant dense<0.000000e+00> : vector<32x32xf32>
    %49 = tpu.matmul %48, %34, %cst_21 {dimension_numbers = #tpu.dot_dimension_numbers<[1], [0], [0], [1], [0, 0, 1, 1], [], []>} : vector<32x32xf32>, vector<32x32xf32>, vector<32x32xf32> -> vector<32x32xf32>
    %c0_22 = arith.constant 0 : index
    %c32 = arith.constant 32 : index
    %50 = vector.load %arg16[%c0_22, %c32] : memref<32x128xf32, #tpu.memory_space<vmem>>, vector<32x32xf32>
    tpu.vector_store %arg16[%c0_22, %c32], %49 {strides = array<i32>} : memref<32x128xf32, #tpu.memory_space<vmem>>, vector<32x32xf32>,
    %51 = vector.extract_strided_slice %12 {offsets = [0, 64], sizes = [32, 32], strides = [1, 1]} : vector<32x384xf32> to vector<32x32xf32>
    %52 = vector.extract_strided_slice %12 {offsets = [0, 192], sizes = [32, 32], strides = [1, 1]} : vector<32x384xf32> to vector<32x32xf32>
    %53 = vector.extract_strided_slice %12 {offsets = [0, 320], sizes = [32, 32], strides = [1, 1]} : vector<32x384xf32> to vector<32x32xf32>
    %cst_23 = arith.constant dense<0.000000e+00> : vector<32x32xf32>
    %54 = tpu.matmul %51, %52, %cst_23 {dimension_numbers = #tpu.dot_dimension_numbers<[1], [1], [0], [0], [0, 0, 1, 0], [], []>} : vector<32x32xf32>, vector<32x32xf32>, vector<32x32xf32> -> vector<32x32xf32>
    %cst_24 = arith.constant 0.176776692 : f32
    %55 = vector.broadcast %cst_24 : f32 to vector<32x32xf32>
    %56 = arith.mulf %54, %55 : vector<32x32xf32>
    %57 = arith.addf %56, %4 : vector<32x32xf32>
    %cst_25 = arith.constant dense<0xFF800000> : vector<32xf32>
    %58 = vector.multi_reduction <maximumf>, %57, %cst_25 [1] : vector<32x32xf32> to vector<32xf32>
    %59 = vector.shape_cast %58 : vector<32xf32> to vector<32x1xf32>
    %60 = vector.broadcast %59 : vector<32x1xf32> to vector<32x32xf32>
    %61 = arith.subf %57, %60 : vector<32x32xf32>
    %62 = math.exp %61 : vector<32x32xf32>
    %cst_26 = arith.constant dense<0.000000e+00> : vector<32xf32>
    %63 = vector.multi_reduction <add>, %62, %cst_26 [1] : vector<32x32xf32> to vector<32xf32>
    %64 = vector.shape_cast %63 : vector<32xf32> to vector<32x1xf32>
    %65 = tpu.reciprocal %64 {approx = true} : vector<32x1xf32> -> vector<32x1xf32>
    %66 = vector.broadcast %65 : vector<32x1xf32> to vector<32x32xf32>
    %67 = arith.mulf %62, %66 : vector<32x32xf32>
    %cst_27 = arith.constant dense<0.000000e+00> : vector<32x32xf32>
    %68 = tpu.matmul %67, %53, %cst_27 {dimension_numbers = #tpu.dot_dimension_numbers<[1], [0], [0], [1], [0, 0, 1, 1], [], []>} : vector<32x32xf32>, vector<32x32xf32>, vector<32x32xf32> -> vector<32x32xf32>
    %c0_28 = arith.constant 0 : index
    %c64 = arith.constant 64 : index
    %69 = vector.load %arg16[%c0_28, %c64] : memref<32x128xf32, #tpu.memory_space<vmem>>, vector<32x32xf32>
    tpu.vector_store %arg16[%c0_28, %c64], %68 {strides = array<i32>} : memref<32x128xf32, #tpu.memory_space<vmem>>, vector<32x32xf32>,
    %70 = vector.extract_strided_slice %12 {offsets = [0, 96], sizes = [32, 32], strides = [1, 1]} : vector<32x384xf32> to vector<32x32xf32>
    %71 = vector.extract_strided_slice %12 {offsets = [0, 224], sizes = [32, 32], strides = [1, 1]} : vector<32x384xf32> to vector<32x32xf32>
    %72 = vector.extract_strided_slice %12 {offsets = [0, 352], sizes = [32, 32], strides = [1, 1]} : vector<32x384xf32> to vector<32x32xf32>
    %cst_29 = arith.constant dense<0.000000e+00> : vector<32x32xf32>
    %73 = tpu.matmul %70, %71, %cst_29 {dimension_numbers = #tpu.dot_dimension_numbers<[1], [1], [0], [0], [0, 0, 1, 0], [], []>} : vector<32x32xf32>, vector<32x32xf32>, vector<32x32xf32> -> vector<32x32xf32>
    %cst_30 = arith.constant 0.176776692 : f32
    %74 = vector.broadcast %cst_30 : f32 to vector<32x32xf32>
    %75 = arith.mulf %73, %74 : vector<32x32xf32>
    %76 = arith.addf %75, %4 : vector<32x32xf32>
    %cst_31 = arith.constant dense<0xFF800000> : vector<32xf32>
    %77 = vector.multi_reduction <maximumf>, %76, %cst_31 [1] : vector<32x32xf32> to vector<32xf32>
    %78 = vector.shape_cast %77 : vector<32xf32> to vector<32x1xf32>
    %79 = vector.broadcast %78 : vector<32x1xf32> to vector<32x32xf32>
    %80 = arith.subf %76, %79 : vector<32x32xf32>
    %81 = math.exp %80 : vector<32x32xf32>
    %cst_32 = arith.constant dense<0.000000e+00> : vector<32xf32>
    %82 = vector.multi_reduction <add>, %81, %cst_32 [1] : vector<32x32xf32> to vector<32xf32>
    %83 = vector.shape_cast %82 : vector<32xf32> to vector<32x1xf32>
    %84 = tpu.reciprocal %83 {approx = true} : vector<32x1xf32> -> vector<32x1xf32>
    %85 = vector.broadcast %84 : vector<32x1xf32> to vector<32x32xf32>
    %86 = arith.mulf %81, %85 : vector<32x32xf32>
    %cst_33 = arith.constant dense<0.000000e+00> : vector<32x32xf32>
    %87 = tpu.matmul %86, %72, %cst_33 {dimension_numbers = #tpu.dot_dimension_numbers<[1], [0], [0], [1], [0, 0, 1, 1], [], []>} : vector<32x32xf32>, vector<32x32xf32>, vector<32x32xf32> -> vector<32x32xf32>
    %c0_34 = arith.constant 0 : index
    %c96 = arith.constant 96 : index
    %88 = vector.load %arg16[%c0_34, %c96] : memref<32x128xf32, #tpu.memory_space<vmem>>, vector<32x32xf32>
    tpu.vector_store %arg16[%c0_34, %c96], %87 {strides = array<i32>} : memref<32x128xf32, #tpu.memory_space<vmem>>, vector<32x32xf32>,
    %c0_35 = arith.constant 0 : index
    %c0_36 = arith.constant 0 : index
    %89 = vector.load %arg16[%c0_35, %c0_36] : memref<32x128xf32, #tpu.memory_space<vmem>>, vector<32x128xf32>
    %90 = arith.truncf %89 : vector<32x128xf32> to vector<32x128xbf16>
    %c0_37 = arith.constant 0 : index
    %c0_38 = arith.constant 0 : index
    %c0_39 = arith.constant 0 : index
    %91 = vector.load %arg5[%c0_37, %c0_38, %c0_39] : memref<1x128x128xbf16, #tpu.memory_space<vmem>>, vector<1x128x128xbf16>
    %92 = vector.shape_cast %91 : vector<1x128x128xbf16> to vector<128x128xbf16>
    %cst_40 = arith.constant dense<0.000000e+00> : vector<32x128xf32>
    %93 = tpu.matmul %90, %92, %cst_40 {dimension_numbers = #tpu.dot_dimension_numbers<[1], [0], [0], [1], [0, 0, 1, 1], [], []>} : vector<32x128xbf16>, vector<128x128xbf16>, vector<32x128xf32> -> vector<32x128xf32>
    %c0_41 = arith.constant 0 : index
    %c0_42 = arith.constant 0 : index
    %c0_43 = arith.constant 0 : index
    %94 = vector.load %arg6[%c0_41, %c0_42, %c0_43] : memref<1x1x128xf32, #tpu.memory_space<vmem>>, vector<1x1x128xf32>
    %95 = vector.shape_cast %94 : vector<1x1x128xf32> to vector<1x128xf32>
    %96 = vector.broadcast %95 : vector<1x128xf32> to vector<32x128xf32>
    %97 = arith.addf %93, %96 : vector<32x128xf32>
    %98 = arith.addf %97, %3 : vector<32x128xf32>
    %c0_44 = arith.constant 0 : index
    %c0_45 = arith.constant 0 : index
    %c0_46 = arith.constant 0 : index
    %99 = vector.load %arg7[%c0_44, %c0_45, %c0_46] : memref<1x1x128xf32, #tpu.memory_space<vmem>>, vector<1x1x128xf32>
    %100 = vector.shape_cast %99 : vector<1x1x128xf32> to vector<1x128xf32>
    %c0_47 = arith.constant 0 : index
    %c0_48 = arith.constant 0 : index
    %c0_49 = arith.constant 0 : index
    %101 = vector.load %arg8[%c0_47, %c0_48, %c0_49] : memref<1x1x128xf32, #tpu.memory_space<vmem>>, vector<1x1x128xf32>
    %102 = vector.shape_cast %101 : vector<1x1x128xf32> to vector<1x128xf32>
    %cst_50 = arith.constant dense<0.000000e+00> : vector<32xf32>
    %103 = vector.multi_reduction <add>, %98, %cst_50 [1] : vector<32x128xf32> to vector<32xf32>
    %104 = vector.shape_cast %103 : vector<32xf32> to vector<32x1xf32>
    %cst_51 = arith.constant 1.280000e+02 : f32
    %105 = vector.broadcast %cst_51 : f32 to vector<32x1xf32>
    %106 = arith.divf %104, %105 : vector<32x1xf32>
    %107 = vector.broadcast %106 : vector<32x1xf32> to vector<32x128xf32>
    %108 = arith.subf %98, %107 : vector<32x128xf32>
    %109 = arith.mulf %108, %108 : vector<32x128xf32>
    %cst_52 = arith.constant dense<0.000000e+00> : vector<32xf32>
    %110 = vector.multi_reduction <add>, %109, %cst_52 [1] : vector<32x128xf32> to vector<32xf32>
    %111 = vector.shape_cast %110 : vector<32xf32> to vector<32x1xf32>
    %cst_53 = arith.constant 1.280000e+02 : f32
    %112 = vector.broadcast %cst_53 : f32 to vector<32x1xf32>
    %113 = arith.divf %111, %112 : vector<32x1xf32>
    %cst_54 = arith.constant 9.99999974E-6 : f32
    %114 = vector.broadcast %cst_54 : f32 to vector<32x1xf32>
    %115 = arith.addf %113, %114 : vector<32x1xf32>
    %116 = math.rsqrt %115 : vector<32x1xf32>
    %117 = vector.broadcast %116 : vector<32x1xf32> to vector<32x128xf32>
    %118 = arith.mulf %108, %117 : vector<32x128xf32>
    %119 = vector.broadcast %100 : vector<1x128xf32> to vector<32x128xf32>
    %120 = arith.mulf %118, %119 : vector<32x128xf32>
    %121 = vector.broadcast %102 : vector<1x128xf32> to vector<32x128xf32>
    %122 = arith.addf %120, %121 : vector<32x128xf32>
    %123 = arith.truncf %122 : vector<32x128xf32> to vector<32x128xbf16>
    %c0_55 = arith.constant 0 : index
    %c0_56 = arith.constant 0 : index
    %c0_57 = arith.constant 0 : index
    %124 = vector.load %arg9[%c0_55, %c0_56, %c0_57] : memref<1x128x512xbf16, #tpu.memory_space<vmem>>, vector<1x128x512xbf16>
    %125 = vector.shape_cast %124 : vector<1x128x512xbf16> to vector<128x512xbf16>
    %cst_58 = arith.constant dense<0.000000e+00> : vector<32x512xf32>
    %126 = tpu.matmul %123, %125, %cst_58 {dimension_numbers = #tpu.dot_dimension_numbers<[1], [0], [0], [1], [0, 0, 1, 1], [], []>} : vector<32x128xbf16>, vector<128x512xbf16>, vector<32x512xf32> -> vector<32x512xf32>
    %c0_59 = arith.constant 0 : index
    %c0_60 = arith.constant 0 : index
    %c0_61 = arith.constant 0 : index
    %127 = vector.load %arg10[%c0_59, %c0_60, %c0_61] : memref<1x1x512xf32, #tpu.memory_space<vmem>>, vector<1x1x512xf32>
    %128 = vector.shape_cast %127 : vector<1x1x512xf32> to vector<1x512xf32>
    %129 = vector.broadcast %128 : vector<1x512xf32> to vector<32x512xf32>
    %130 = arith.addf %126, %129 : vector<32x512xf32>
    %cst_62 = arith.constant 5.000000e-01 : f32
    %131 = vector.broadcast %cst_62 : f32 to vector<32x512xf32>
    %132 = arith.mulf %131, %130 : vector<32x512xf32>
    %cst_63 = arith.constant 0.707106769 : f32
    %133 = vector.broadcast %cst_63 : f32 to vector<32x512xf32>
    %134 = arith.mulf %130, %133 : vector<32x512xf32>
    %135 = math.erf %134 : vector<32x512xf32>
    %cst_64 = arith.constant 1.000000e+00 : f32
    %136 = vector.broadcast %cst_64 : f32 to vector<32x512xf32>
    %137 = arith.addf %136, %135 : vector<32x512xf32>
    %138 = arith.mulf %132, %137 : vector<32x512xf32>
    %139 = arith.truncf %138 : vector<32x512xf32> to vector<32x512xbf16>
    %c0_65 = arith.constant 0 : index
    %c0_66 = arith.constant 0 : index
    %c0_67 = arith.constant 0 : index
    %140 = vector.load %arg11[%c0_65, %c0_66, %c0_67] : memref<1x512x128xbf16, #tpu.memory_space<vmem>>, vector<1x512x128xbf16>
    %141 = vector.shape_cast %140 : vector<1x512x128xbf16> to vector<512x128xbf16>
    %cst_68 = arith.constant dense<0.000000e+00> : vector<32x128xf32>
    %142 = tpu.matmul %139, %141, %cst_68 {dimension_numbers = #tpu.dot_dimension_numbers<[1], [0], [0], [1], [0, 0, 1, 1], [], []>} : vector<32x512xbf16>, vector<512x128xbf16>, vector<32x128xf32> -> vector<32x128xf32>
    %c0_69 = arith.constant 0 : index
    %c0_70 = arith.constant 0 : index
    %c0_71 = arith.constant 0 : index
    %143 = vector.load %arg12[%c0_69, %c0_70, %c0_71] : memref<1x1x128xf32, #tpu.memory_space<vmem>>, vector<1x1x128xf32>
    %144 = vector.shape_cast %143 : vector<1x1x128xf32> to vector<1x128xf32>
    %145 = vector.broadcast %144 : vector<1x128xf32> to vector<32x128xf32>
    %146 = arith.addf %142, %145 : vector<32x128xf32>
    %147 = arith.addf %146, %122 : vector<32x128xf32>
    %c0_72 = arith.constant 0 : index
    %c0_73 = arith.constant 0 : index
    %c0_74 = arith.constant 0 : index
    %148 = vector.load %arg13[%c0_72, %c0_73, %c0_74] : memref<1x1x128xf32, #tpu.memory_space<vmem>>, vector<1x1x128xf32>
    %149 = vector.shape_cast %148 : vector<1x1x128xf32> to vector<1x128xf32>
    %c0_75 = arith.constant 0 : index
    %c0_76 = arith.constant 0 : index
    %c0_77 = arith.constant 0 : index
    %150 = vector.load %arg14[%c0_75, %c0_76, %c0_77] : memref<1x1x128xf32, #tpu.memory_space<vmem>>, vector<1x1x128xf32>
    %151 = vector.shape_cast %150 : vector<1x1x128xf32> to vector<1x128xf32>
    %cst_78 = arith.constant dense<0.000000e+00> : vector<32xf32>
    %152 = vector.multi_reduction <add>, %147, %cst_78 [1] : vector<32x128xf32> to vector<32xf32>
    %153 = vector.shape_cast %152 : vector<32xf32> to vector<32x1xf32>
    %cst_79 = arith.constant 1.280000e+02 : f32
    %154 = vector.broadcast %cst_79 : f32 to vector<32x1xf32>
    %155 = arith.divf %153, %154 : vector<32x1xf32>
    %156 = vector.broadcast %155 : vector<32x1xf32> to vector<32x128xf32>
    %157 = arith.subf %147, %156 : vector<32x128xf32>
    %158 = arith.mulf %157, %157 : vector<32x128xf32>
    %cst_80 = arith.constant dense<0.000000e+00> : vector<32xf32>
    %159 = vector.multi_reduction <add>, %158, %cst_80 [1] : vector<32x128xf32> to vector<32xf32>
    %160 = vector.shape_cast %159 : vector<32xf32> to vector<32x1xf32>
    %cst_81 = arith.constant 1.280000e+02 : f32
    %161 = vector.broadcast %cst_81 : f32 to vector<32x1xf32>
    %162 = arith.divf %160, %161 : vector<32x1xf32>
    %cst_82 = arith.constant 9.99999974E-6 : f32
    %163 = vector.broadcast %cst_82 : f32 to vector<32x1xf32>
    %164 = arith.addf %162, %163 : vector<32x1xf32>
    %165 = math.rsqrt %164 : vector<32x1xf32>
    %166 = vector.broadcast %165 : vector<32x1xf32> to vector<32x128xf32>
    %167 = arith.mulf %157, %166 : vector<32x128xf32>
    %168 = vector.broadcast %149 : vector<1x128xf32> to vector<32x128xf32>
    %169 = arith.mulf %167, %168 : vector<32x128xf32>
    %170 = vector.broadcast %151 : vector<1x128xf32> to vector<32x128xf32>
    %171 = arith.addf %169, %170 : vector<32x128xf32>
    %c0_83 = arith.constant 0 : index
    %c0_84 = arith.constant 0 : index
    %172 = vector.load %arg15[%c0_83, %c0_84] : memref<32x128xf32, #tpu.memory_space<vmem>>, vector<32x128xf32>
    tpu.vector_store %arg15[%c0_83, %c0_84], %171 {strides = array<i32>} : memref<32x128xf32, #tpu.memory_space<vmem>>, vector<32x128xf32>,
    return
  }
  func.func @transform_0(%arg0: i32) -> (i32, i32) {
    %c0_i32 = arith.constant 0 : i32
    %c0_i32_0 = arith.constant 0 : i32
    %c0_i32_1 = arith.constant 0 : i32
    return %c0_i32, %c0_i32_0 : i32, i32
  }
  func.func @transform_1(%arg0: i32) -> (i32, i32) {
    %c0_i32 = arith.constant 0 : i32
    %c0_i32_0 = arith.constant 0 : i32
    %c0_i32_1 = arith.constant 0 : i32
    return %c0_i32, %c0_i32_0 : i32, i32
  }
  func.func @transform_2(%arg0: i32) -> (i32, i32, i32) {
    %c0_i32 = arith.constant 0 : i32
    %c0_i32_0 = arith.constant 0 : i32
    %c0_i32_1 = arith.constant 0 : i32
    return %arg0, %c0_i32, %c0_i32_0 : i32, i32, i32
  }
  func.func @transform_3(%arg0: i32) -> (i32, i32, i32) {
    %c0_i32 = arith.constant 0 : i32
    %c0_i32_0 = arith.constant 0 : i32
    %c0_i32_1 = arith.constant 0 : i32
    return %arg0, %c0_i32, %c0_i32_0 : i32, i32, i32
  }
  func.func @transform_4(%arg0: i32) -> (i32, i32, i32) {
    %c0_i32 = arith.constant 0 : i32
    %c0_i32_0 = arith.constant 0 : i32
    %c0_i32_1 = arith.constant 0 : i32
    return %arg0, %c0_i32, %c0_i32_0 : i32, i32, i32
  }
  func.func @transform_5(%arg0: i32) -> (i32, i32, i32) {
    %c0_i32 = arith.constant 0 : i32
    %c0_i32_0 = arith.constant 0 : i32
    %c0_i32_1 = arith.constant 0 : i32
    return %arg0, %c0_i32, %c0_i32_0 : i32, i32, i32
  }
  func.func @transform_6(%arg0: i32) -> (i32, i32, i32) {
    %c0_i32 = arith.constant 0 : i32
    %c0_i32_0 = arith.constant 0 : i32
    %c0_i32_1 = arith.constant 0 : i32
    return %arg0, %c0_i32, %c0_i32_0 : i32, i32, i32
  }
  func.func @transform_7(%arg0: i32) -> (i32, i32, i32) {
    %c0_i32 = arith.constant 0 : i32
    %c0_i32_0 = arith.constant 0 : i32
    %c0_i32_1 = arith.constant 0 : i32
    return %arg0, %c0_i32, %c0_i32_0 : i32, i32, i32
  }
  func.func @transform_8(%arg0: i32) -> (i32, i32, i32) {
    %c0_i32 = arith.constant 0 : i32
    %c0_i32_0 = arith.constant 0 : i32
    %c0_i32_1 = arith.constant 0 : i32
    return %arg0, %c0_i32, %c0_i32_0 : i32, i32, i32
  }
  func.func @transform_9(%arg0: i32) -> (i32, i32, i32) {
    %c0_i32 = arith.constant 0 : i32
    %c0_i32_0 = arith.constant 0 : i32
    %c0_i32_1 = arith.constant 0 : i32
    return %arg0, %c0_i32, %c0_i32_0 : i32, i32, i32
  }
  func.func @transform_10(%arg0: i32) -> (i32, i32, i32) {
    %c0_i32 = arith.constant 0 : i32
    %c0_i32_0 = arith.constant 0 : i32
    %c0_i32_1 = arith.constant 0 : i32
    return %arg0, %c0_i32, %c0_i32_0 : i32, i32, i32
  }
  func.func @transform_11(%arg0: i32) -> (i32, i32, i32) {
    %c0_i32 = arith.constant 0 : i32
    %c0_i32_0 = arith.constant 0 : i32
    %c0_i32_1 = arith.constant 0 : i32
    return %arg0, %c0_i32, %c0_i32_0 : i32, i32, i32
  }
  func.func @transform_12(%arg0: i32) -> (i32, i32, i32) {
    %c0_i32 = arith.constant 0 : i32
    %c0_i32_0 = arith.constant 0 : i32
    %c0_i32_1 = arith.constant 0 : i32
    return %arg0, %c0_i32, %c0_i32_0 : i32, i32, i32
  }
  func.func @transform_13(%arg0: i32) -> (i32, i32, i32) {
    %c0_i32 = arith.constant 0 : i32
    %c0_i32_0 = arith.constant 0 : i32
    %c0_i32_1 = arith.constant 0 : i32
    return %arg0, %c0_i32, %c0_i32_0 : i32, i32, i32
  }
  func.func @transform_14(%arg0: i32) -> (i32, i32) {
    %c0_i32 = arith.constant 0 : i32
    %c0_i32_0 = arith.constant 0 : i32
    %c0_i32_1 = arith.constant 0 : i32
    return %c0_i32, %c0_i32_0 : i32, i32
  }
}

</mosaic_0001>

<bundles_post_ra>
// kernel: camembert_classifier_forward.1
= control target key start
LH: loop header
LB: loop body
LE: loop exit
PB: predicated region body
PF: predicated region fallthrough
CT: control target
= control target key end

     0   :  { %s5215_s0 = inlined_call_operand.vmem [shape: f32[32,128], index: 0, kind: input, shape index: {}]   ;;  %s5216_s1 = inlined_call_operand.vmem [shape: f32[32,32], index: 1, kind: input, shape index: {}]   ;;  %s5217_s2 = inlined_call_operand.hbm [shape: bf16[2,128,384], index: 2, kind: input, shape index: {}]   ;;  %s5218_s3 = inlined_call_operand.vmem [shape: f32[2,1,384], index: 3, kind: input, shape index: {}]   ;;  %s5219_s4 = inlined_call_operand.hbm [shape: bf16[2,128,128], index: 4, kind: input, shape index: {}]   ;;  %s5220_s5 = inlined_call_operand.vmem [shape: f32[2,1,128], index: 5, kind: input, shape index: {}]   ;;  %s5221_s6 = inlined_call_operand.vmem [shape: f32[2,1,128], index: 6, kind: input, shape index: {}]   ;;  %s5222_s7 = inlined_call_operand.vmem [shape: f32[2,1,128], index: 7, kind: input, shape index: {}]   ;;  %s5223_s8 = inlined_call_operand.vmem [shape: bf16[2,128,512], index: 8, kind: input, shape index: {}]   ;;  %s5224_s9 = inlined_call_operand.vmem [shape: f32[2,1,512], index: 9, kind: input, shape index: {}]   ;;  %s5225_s10 = inlined_call_operand.vmem [shape: bf16[2,512,128], index: 10, kind: input, shape index: {}]   ;;  %s5226_s11 = inlined_call_operand.vmem [shape: f32[2,1,128], index: 11, kind: input, shape index: {}]   ;;  %s5227_s12 = inlined_call_operand.vmem [shape: f32[2,1,128], index: 12, kind: input, shape index: {}]   ;;  %s5228_s13 = inlined_call_operand.vmem [shape: f32[2,1,128], index: 13, kind: input, shape index: {}]   ;;  %s5229_s14 = inlined_call_operand.vmem [shape: f32[32,128], index: 14, kind: output, shape index: {}]  }
   0x1   :  { %5239 = sst [smem:[#allocation14_spill]] %s5216_s1 }
   0x2   :  { %5240 = sst [smem:[#allocation15_spill]] %s5217_s2 }
   0x3   :  { %5241 = sst [smem:[#allocation16_spill]] %s5218_s3 }
   0x4   :  { %5242 = sst [smem:[#allocation17_spill]] %s5219_s4 }
   0x5   :  { %5243 = sst [smem:[#allocation18_spill]] %s5223_s8 }
   0x6   :  { %5244 = sst [smem:[#allocation19_spill]] %s5229_s14 }
   0x7   :  { %19 = vsyncpa [#allocation4], 0 }
   0x8   :  { %21 = vsyncpa [#allocation4 + $0x1], 0 }
   0x9   :  { %22 = vsyncpa [#allocation6], 0 }
   0xa   :  { %24 = vsyncpa [#allocation6 + $0x1], 0  ;;  %s4422_s29 = smov 0   ;;  %s4424_s30 = smov 0  }
   0xb   :  { %s4426_s15 = smov 0   ;;  %s4428_s16 = smov 0  }
   0xc LB: > { %5245 = sst [smem:[#allocation9_spill]] %s4327_s30  ;;  %s4441_s17 = sadd.s32 4294967295, %s4335_s16   ;;  %s4335_s16 = sphi %s4428_s16, %s5268_s16   ;;  %s4331_s15 = sphi %s4426_s15, %s5271_s15   ;;  %s4327_s30 = sphi %s4424_s30, %s5270_s30   ;;  %s4323_s29 = sphi %s4422_s29, %s5269_s29  }
   0xd   : > { %5246 = sst [smem:[#allocation10_spill]] %s4331_s15  ;;  %s4444_s18 = sadd.s32 1, %s4335_s16  }
   0xe   : > { %5247 = sst [smem:[#allocation11_spill]] %s4444_s18  ;;  %s76_s19 = ssub.s32 %s4335_s16, %s4444_s18 }
   0xf   : > { %s79_s20 = sadd.s32 1, %s4331_s15  ;;  %p77_p0 = scmp.eq.s32.totalorder %s76_s19, 0 }
  0x10   : > { %p86_p1 = scmp.ne.s32.totalorder %s4331_s15, %s4327_s30  ;;  %p87_p2 = scmp.eq.s32.totalorder %s4335_s16, 0 }
  0x11   : > { %p92_p3 = scmp.ne.s32.totalorder %s4327_s30, %s4323_s29  ;;  %p93_p5 = scmp.eq.s32.totalorder %s4441_s17, 0 }
  0x12   : > { %s4454_s21 = scalar_select %p77_p0, %s4331_s15, %s79_s20  }
  0x13   : > { %p88_p4 = por %p87_p2, %p86_p1  ;;  %p3900_p6 = scmp.lt.s32.totalorder %s4335_s16, 2 }
  0x14   : > { %5248 = sst [smem:[#allocation12_spill]] %s4454_s21  ;;  %p4458_p7 = por %p93_p5, %p92_p3 }
  0x15   : > { %s4463_s23 = sand.u32 1, %s4331_s15   ;;  %s3886_s25 = smul.u32 3072, %s4335_s16 }
  0x16   : > { %s5249_s22 = scalar_select %p4458_p7, 1, 0 }
  0x17   : > { %s3885_s24 = smul.u32 192, %s4463_s23  ;;  %p4467_p8 = pnand %p3900_p6, %p88_p4 }
  0x18   : > { %s5251_s2 = sld [smem:[#allocation15_spill]]  ;;  %s430_s21 = scalar_lea.sflag [#allocation4], %s4463_s23 }
  0x19   : > { %s433_s19 = scalar_lea.vmem [#allocation3], %s3885_s24  ;;  %p4239_p11 = pneg %p4467_p8 }
  0x1a   : > { %s440_s20 = sshll.u32 %s433_s19, 4  ;;  %s4476_s20 = int_to_ptr.vmem [resolvable:$true] %s440_s20 }
  0x1e   : > { %s4474_s29 = scalar_lea.hbm %s5251_s2, %s3886_s25  ;;  %s4242_s28 = scalar_lea.hbm %s5251_s2, 6144 }
  0x1f   : > { %s4237_s15 = scalar_lea.hbm %s4474_s29, 3072  ;;  %p4243_p0 = scmp.lt.u32.totalorder %s4474_s29, %s5251_s2 }
  0x20   : > { %p4238_p10 = scmp.ne.s32.totalorder %s4474_s29, %s4237_s15  ;;  %p4244_p1 = scmp.lt.u32.totalorder %s4242_s28, %s4237_s15 }
  0x21   : > { %p4246_p3 = scmp.lt.u32.totalorder %s4237_s15, %s4474_s29 }
  0x22   : > { %p4240_p12 = pnand %p4239_p11, %p4238_p10  ;;  %p4245_p2 = por %p4244_p1, %p4243_p0 }
  0x24   : > { %p4241_p13 = pneg %p4240_p12  ;;  %p4247_p4 = por %p4246_p3, %p4245_p2 }
  0x26   : > { %p4248_p5 = pnand %p4247_p4, %p4241_p13 }
  0x28   : > { %4251 = shalt.err (!%p4248_p5)
}
  0x29   : > { %s4252_s24 = scalar_lea.vmem %s4476_s20, 3072  ;;  %s4337_s19 = smov [#allocation3]  }
  0x2a   : > { %p4253_p6 = scmp.ne.s32.totalorder %s4476_s20, %s4252_s24  ;;  %s4257_s25 = sshll.u32 %s4337_s19, 4  ;;  %s4258_s25 = int_to_ptr.vmem [resolvable:$false] %s4257_s25 }
  0x2b   : > { %s4259_s1 = scalar_lea.vmem %s4258_s25, 6144  ;;  %p4260_p9 = scmp.lt.s32.totalorder %s4476_s20, %s4258_s25 }
  0x2c   : > { %p4255_p10 = pnand %p4253_p6, %p4239_p11  ;;  %p4261_p0 = scmp.lt.s32.totalorder %s4259_s1, %s4252_s24 }
  0x2e   : > { %p4256_p12 = pneg %p4255_p10  ;;  %p4262_p1 = por %p4261_p0, %p4260_p9 }
  0x30   : > { %p4263_p2 = pnand %p4262_p1, %p4256_p12 }
  0x32   : > { %4266 = shalt.err (!%p4263_p2)
}
  0x33   : > { %s4338_s15 = smov 192   ;;  %s4339_s18 = smov 12  }
  0x34   : > { %3896 = dma.hbm_to_vmem [thread:$0]  (!%p4467_p8), %s4474_s29, 3072, %s4476_s20, %s430_s21, %s4338_s15, %s4338_s15, %s4339_s18  }
  0x35   : > { %p535_p13 = scmp.lt.s32.totalorder %s4335_s16, 3  ;;  %s3347_s27 = sshll.u32 %s4463_s23, 6 }
  0x36   : > { %s3510_s28 = sshll.u32 %s4335_s16, 10  ;;  %p5252_p9 = scmp.ge.s32.totalorder %s4335_s16, 1 }
  0x37   : > { %s5254_s4 = sld [smem:[#allocation17_spill]]  ;;  %s461_s2 = scalar_lea.vmem [#allocation5], %s3347_s27 }
  0x38   : > { %p4512_p3 = pnand %p5252_p9, %p535_p13  ;;  %s468_s14 = sshll.u32 %s461_s2, 4  ;;  %s4521_s14 = int_to_ptr.vmem [resolvable:$true] %s468_s14 }
  0x39   : > { %s458_s21 = scalar_lea.sflag [#allocation6], %s4463_s23 }
  0x3d   : > { %s4519_s1 = scalar_lea.hbm %s5254_s4, %s3510_s28  ;;  %s4272_s15 = scalar_lea.hbm %s5254_s4, 2048 }
  0x3e   : > { %s4267_s29 = scalar_lea.hbm %s4519_s1, 1024  ;;  %p4273_p10 = scmp.lt.u32.totalorder %s4519_s1, %s5254_s4 }
  0x3f   : > { %p4268_p4 = scmp.ne.s32.totalorder %s4519_s1, %s4267_s29  ;;  %p4274_p12 = scmp.lt.u32.totalorder %s4272_s15, %s4267_s29 }
  0x40   : > { %p4276_p1 = scmp.lt.u32.totalorder %s4267_s29, %s4519_s1 }
  0x41   : > { %p4270_p5 = pnand %p4268_p4, %p4239_p11  ;;  %p4275_p0 = por %p4274_p12, %p4273_p10 }
  0x43   : > { %p4271_p6 = pneg %p4270_p5  ;;  %p4277_p2 = por %p4276_p1, %p4275_p0 }
  0x45   : > { %p4278_p13 = pnand %p4277_p2, %p4271_p6 }
  0x47   : > { %4281 = shalt.err (!%p4278_p13)
}
  0x48   : > { %s4282_s2 = scalar_lea.vmem %s4521_s14, 1024  ;;  %s4340_s27 = smov [#allocation5]  }
  0x49   : > { %p4283_p9 = scmp.ne.s32.totalorder %s4521_s14, %s4282_s2  ;;  %s4287_s19 = sshll.u32 %s4340_s27, 4  ;;  %s4288_s19 = int_to_ptr.vmem [resolvable:$false] %s4287_s19 }
  0x4a   : > { %s4289_s25 = scalar_lea.vmem %s4288_s19, 2048  ;;  %p4290_p7 = scmp.lt.s32.totalorder %s4521_s14, %s4288_s19 }
  0x4b   : > { %p4285_p4 = pnand %p4283_p9, %p4239_p11  ;;  %p4291_p10 = scmp.lt.s32.totalorder %s4289_s25, %s4282_s2 }
  0x4d   : > { %p4286_p5 = pneg %p4285_p4  ;;  %p4292_p12 = por %p4291_p10, %p4290_p7 }
  0x4f   : > { %p4293_p0 = pnand %p4292_p12, %p4286_p5 }
  0x51   : > { %4296 = shalt.err (!%p4293_p0)
}
  0x52   : > { %s4341_s29 = smov 64   ;;  %s4342_s16 = smov 4  }
  0x53   : > { %3899 = dma.hbm_to_vmem [thread:$0]  (!%p4467_p8), %s4519_s1, 1024, %s4521_s14, %s458_s21, %s4341_s29, %s4341_s29, %s4342_s16  }
  0x54   : > { %539 = sbr.rel (%p4512_p3) target bundleno = 3752 (0xea8), region = 76 }
  0x5b   : > { %s541_s20 = sand.u32 1, %s4327_s30   ;;  %p5255_p7 = scmp.ne.s32.totalorder %s5249_s22, 0 }
  0x5c   : > { %s3887_s15 = smul.u32 192, %s541_s20  ;;  %s542_s18 = scalar_lea.sflag [#allocation4], %s541_s20 }
  0x5e   : > { %s4552_s28 = scalar_lea.vmem [#allocation3], %s3887_s15 }
  0x5f   : > { %4314 = dma.done.wait (%p5255_p7), %s542_s18, 3072  }
  0x60   : > { %4316 = vsyncadd (%p5255_p7), %s542_s18, 4294964224  ;;  %s3351_s2 = sshll.u32 %s541_s20, 6  ;;  %s551_s26 = scalar_lea.sflag [#allocation6], %s541_s20 }
  0x61   : > { %s4558_s23 = scalar_lea.vmem [#allocation5], %s3351_s2 }
  0x62   : > { %5256 = sst [smem:[#allocation13_spill]] %s4558_s23 }
  0x63   : > { %4318 = dma.done.wait (%p5255_p7), %s551_s26, 1024  }
  0x64   : > { %4320 = vsyncadd (%p5255_p7), %s551_s26, 4294966272  ;;  %p635_p8 = scmp.lt.s32.totalorder %s4441_s17, 1  ;;  %s5257_s3 = sld [smem:[#allocation16_spill]] }
  0x65   : > { %s5258_s8 = sld [smem:[#allocation18_spill]]  ;;  %p3357_p11 = scmp.ne.s32.totalorder %s4441_s17, 0 }
  0x66   : > { %s4566_s14 = scalar_select %p635_p8, %s4441_s17, 1 }
  0x67   : > { %675 = sbr.rel (%p3357_p11) target bundleno = 111 (0x6f), region = 88  ;;  %v676_v0 = vld [vmem:[%s5215_s0] sm:$0xff] (!%p3357_p11)  ;;  %v677_v1 = vld [vmem:[%s5215_s0 + $0x8] sm:$0xff] (!%p3357_p11)  ;;  %v678_v2 = vld [vmem:[%s5215_s0 + $0x10] sm:$0xff] (!%p3357_p11)  ;;  %s5259_s15 = sld [smem:[#allocation19_spill]] (!%p3357_p11) }
  0x68   : > { %s3888_s24 = smul.u32 3, %s4566_s14  ;;  %s3511_s26 = sshll.u32 %s4566_s14, 8  ;;  %v679_v3 = vld [vmem:[%s5215_s0 + $0x18] sm:$0xff] (!%p3357_p11) }
  0x69   : > { %s3354_s1 = sshll.u32 %s4566_s14, 2  ;;  %s4601_s16 = scalar_lea.vmem %s5225_s10, %s3511_s26 }
  0x6a   : > { %s4584_s2 = scalar_lea.vmem %s5257_s3, %s3888_s24  ;;  %s4596_s27 = scalar_lea.vmem %s5224_s9, %s3354_s1 }
  0x6b   : > { %s4590_s23 = scalar_lea.vmem %s5258_s8, %s3511_s26  ;;  %s664_s18 = scalar_lea.vmem %s5226_s11, %s4566_s14 }
  0x6c   : > { %s667_s4 = scalar_lea.vmem %s5227_s12, %s4566_s14  ;;  %s670_s8 = scalar_lea.vmem %s5228_s13, %s4566_s14 }
  0x6d   : > { %680 = vst [vmem:[%s5259_s15] sm:$0xff] (!%p3357_p11), %v676_v0  ;;  %681 = vst [vmem:[%s5259_s15 + $0x8] sm:$0xff] (!%p3357_p11), %v677_v1 }
  0x6e   : > { %682 = vst [vmem:[%s5259_s15 + $0x10] sm:$0xff] %v678_v2  ;;  %683 = vst [vmem:[%s5259_s15 + $0x18] sm:$0xff] %v679_v3 }
  0x6f PF: > { %v4001_v4 = vld [vmem:[%s4552_s28 + $0x4] ss:$12 sps:$4 sm:$0xff]   ;;  %v4003_v5 = vld [vmem:[%s4552_s28] ss:$12 sps:$4 sm:$0xff]   ;;  %v4343_v6 = vmov 0   ;;  %s5260_s25 = sld [smem:[#allocation19_spill]]  ;;  %v728_v27 = vlaneseq  ;;  %s5265_s22 = scalar_lea.vmem %s5220_s5, %s4566_s14 }
  0x70   : > { %903 = vmatprep.mubr.bf16.mxu0 %v4343_v6  ;;  %871 = vmatprep.subr.bf16.mxu0 %v4001_v4  ;;  %v4004_v7 = vld [vmem:[%s4552_s28 + $0x1c] ss:$12 sps:$4 sm:$0xff]   ;;  %v4006_v8 = vld [vmem:[%s4552_s28 + $0x18] ss:$12 sps:$4 sm:$0xff]   ;;  %v4007_v9 = vld [vmem:[%s4552_s28 + $0x34] ss:$12 sps:$4 sm:$0xff]  }
  0x71   : > { %872 = vmatpush1.bf16.msra.mxu0 %v4003_v5  ;;  %v4009_v10 = vld [vmem:[%s4552_s28 + $0x30] ss:$12 sps:$4 sm:$0xff]   ;;  %v4010_v11 = vld [vmem:[%s4552_s28 + $0x4c] ss:$12 sps:$4 sm:$0xff]   ;;  %v4012_v13 = vld [vmem:[%s4552_s28 + $0x48] ss:$12 sps:$4 sm:$0xff]  }
  0x72   : > { %873 = vmatprep.subr.bf16.mxu0 %v4004_v7  ;;  %v4013_v15 = vld [vmem:[%s4552_s28 + $0x64] ss:$12 sps:$4 sm:$0xff]   ;;  %v4015_v17 = vld [vmem:[%s4552_s28 + $0x60] ss:$12 sps:$4 sm:$0xff]   ;;  %v4016_v18 = vld [vmem:[%s4552_s28 + $0x7c] ss:$12 sps:$4 sm:$0xff]  }
  0x73   : > { %v4018_v19 = vld [vmem:[%s4552_s28 + $0x78] ss:$12 sps:$4 sm:$0xff]   ;;  %v4019_v20 = vld [vmem:[%s4552_s28 + $0x94] ss:$12 sps:$4 sm:$0xff]   ;;  %v4021_v21 = vld [vmem:[%s4552_s28 + $0x90] ss:$12 sps:$4 sm:$0xff]  }
  0x74   : > { %v4022_v22 = vld [vmem:[%s4552_s28 + $0xac] ss:$12 sps:$4 sm:$0xff]   ;;  %v4024_v23 = vld [vmem:[%s4552_s28 + $0xa8] ss:$12 sps:$4 sm:$0xff]   ;;  %v4670_v28 = vshrl.u32 %v728_v27, 7  ;;  %vm973_vm0 = vcmask 261120  }
  0x75   : > { %874 = vmatpush1.bf16.msra.mxu0 %v4006_v8  ;;  %v684_v12 = vld [vmem:[%s5260_s25] sm:$0xff]  ;;  %v685_v14 = vld [vmem:[%s5260_s25 + $0x8] sm:$0xff]  ;;  %v686_v24 = vld [vmem:[%s5260_s25 + $0x10] sm:$0xff]  ;;  %s5263_s1 = sld [smem:[#allocation14_spill]]  ;;  %s4344_s15 = smov 96   ;;  %vm1534_vm2 = vcmask 523520  }
  0x76   : > { %875 = vmatprep.subr.bf16.mxu0 %v4007_v9  ;;  %v692_v16 = vpack.c.bf16 %v685_v14, %v684_v12  ;;  %v687_v25 = vld [vmem:[%s5260_s25 + $0x18] sm:$0xff]  ;;  %v730_v29 = vsub.s32 0, %v4670_v28  ;;  %v4674_v30 = vld [vmem:[%s4584_s2] sm:$0x7]  ;;  %v734_v31 = vsub.s32 1, %v4670_v28  ;;  %vm4689_vm1 = vmpackc.low %vm973_vm0, %vm973_vm0  ;;  %s4345_s3 = smov 64  }
  0x77   : > { %v693_v26 = vpack.c.bf16 %v687_v25, %v686_v24  ;;  %v4025_v55 = vld [vmem:[%s4552_s28 + $0x8] ss:$12 sps:$4 sm:$0xff]   ;;  %v4026_v56 = vld [vmem:[%s4552_s28 + $0x20] ss:$12 sps:$4 sm:$0xff]   ;;  %v4027_v57 = vld [vmem:[%s4552_s28 + $0x38] ss:$12 sps:$4 sm:$0xff]  }
  0x78   : > { %3669 = vmatprep.mubr.bf16.mxu1 %v692_v16  ;;  %v731_v32 = vrot.slane %v4674_v30, %v730_v29  ;;  %v735_v34 = vrot.slane %v4674_v30, %v734_v31  ;;  %3653 = vmatprep.subr.bf16.mxu1 %v4025_v55  ;;  %v4028_v58 = vld [vmem:[%s4552_s28 + $0x50] ss:$12 sps:$4 sm:$0xff]   ;;  %v4029_v59 = vld [vmem:[%s4552_s28 + $0x68] ss:$12 sps:$4 sm:$0xff]   ;;  %v4030_v60 = vld [vmem:[%s4552_s28 + $0x80] ss:$12 sps:$4 sm:$0xff]  }
  0x79   : > { %876 = vmatpush1.bf16.msra.mxu0 %v4009_v10  ;;  %3654 = vmatpush3.bf16.msra.mxu1 %v4025_v55  ;;  %v4031_v61 = vld [vmem:[%s4552_s28 + $0x98] ss:$12 sps:$4 sm:$0xff]   ;;  %v4032_v62 = vld [vmem:[%s4552_s28 + $0xb0] ss:$12 sps:$4 sm:$0xff]   ;;  %s4346_s24 = smov 32   ;;  %s5264_s17 = sld [smem:[#allocation13_spill]] }
  0x7a   : > { %877 = vmatprep.subr.bf16.mxu0 %v4010_v11  ;;  %3655 = vmatprep.subr.bf16.mxu1 %v4026_v56  ;;  %vm1833_vm3 = vcmask 785920   ;;  %vm2132_vm4 = vcmask 1048320  }
  0x7b   : > { %v4728_v1 = vld [vmem:[%s5263_s1] sm:$0xff]  ;;  %v4733_v4 = vld [vmem:[%s5263_s1 + $0x8] sm:$0xff]  ;;  %v4739_v9 = vld [vmem:[%s5263_s1 + $0x10] sm:$0xff] }
  0x7c   : > { %v4746_v14 = vld [vmem:[%s5263_s1 + $0x18] sm:$0xff] }
  0x7d   : > { %878 = vmatpush1.bf16.msra.mxu0 %v4012_v13  ;;  %3656 = vmatpush3.bf16.msra.mxu1 %v4026_v56 }
  0x7e   : > { %879 = vmatprep.subr.bf16.mxu0 %v4013_v15  ;;  %3657 = vmatprep.subr.bf16.mxu1 %v4027_v57 }
  0x81   : > { %880 = vmatpush1.bf16.msra.mxu0 %v4015_v17  ;;  %3658 = vmatpush3.bf16.msra.mxu1 %v4027_v57 }
  0x82   : > { %881 = vmatprep.subr.bf16.mxu0 %v4016_v18  ;;  %3659 = vmatprep.subr.bf16.mxu1 %v4028_v58 }
  0x85   : > { %882 = vmatpush1.bf16.msra.mxu0 %v4018_v19  ;;  %3660 = vmatpush3.bf16.msra.mxu1 %v4028_v58 }
  0x86   : > { %883 = vmatprep.subr.bf16.mxu0 %v4019_v20  ;;  %3661 = vmatprep.subr.bf16.mxu1 %v4029_v59  ;;  %v738_v20 = vsub.s32 2, %v4670_v28 }
  0x89   : > { %884 = vmatpush1.bf16.msra.mxu0 %v4021_v21  ;;  %3662 = vmatpush3.bf16.msra.mxu1 %v4029_v59  ;;  %v739_v21 = vrot.slane %v4674_v30, %v738_v20 }
  0x8a   : > { %885 = vmatprep.subr.bf16.mxu0 %v4022_v22  ;;  %3663 = vmatprep.subr.bf16.mxu1 %v4030_v60 }
  0x8d   : > { %886 = vmatpush1.bf16.msra.mxu0 %v4024_v23  ;;  %3664 = vmatpush3.bf16.msra.mxu1 %v4030_v60 }
  0x8e   : > { %3665 = vmatprep.subr.bf16.mxu1 %v4031_v61 }
  0x90   : > { %904 = vmatmul.mubr.bf16.vlgmr.msra.gmra.mrb[0].mxu0 %v692_v16 }
  0x91   : > { %913 = vmatprep.mubr.bf16.mxu0 %v4343_v6  ;;  %3666 = vmatpush3.bf16.msra.mxu1 %v4031_v61 }
  0x92   : > { %3667 = vmatprep.subr.bf16.mxu1 %v4032_v62 }
  0x95   : > { %3668 = vmatpush3.bf16.msra.mxu1 %v4032_v62 }
  0x98   : > { %914 = vmatmul.mubr.bf16.gmra.mrb[4].mxu0 %v693_v26  ;;  %3670 = vmatmul.mubr.bf16.vlgmr.msra.gmra.mrb[0].mxu1 %v693_v26 }
 0x163   : > { %v905_v33 = vpop.f32.mrb[0].mxu0 }
 0x164   : > { %v4683_v35 = vadd.f32 %v905_v33, %v731_v32  ;;  %v907_v36 = vpop.f32.mrb[1].mxu0 }
 0x165   : > { %v909_v37 = vpop.f32.mrb[2].mxu0  ;;  %v908_v39 = vadd.f32 %v907_v36, %v735_v34 }
 0x166   : > { %v911_v38 = vpop.f32.mrb[3].mxu0  ;;  %3681 = vmatprep.mubr.msk.f32.mxu0 %vm973_vm0, %v4683_v35  ;;  %v4705_v52 = vadd.f32 %v909_v37, %v731_v32 }
 0x167   : > { %v912_v40 = vadd.f32 %v911_v38, %v735_v34 }
 0x169   : > { %v3805_v42 = vpack.c.bf16 %v912_v40, %v908_v39  ;;  %v4693_v43 = vpack.i.bf16 %v912_v40, %v908_v39 }
 0x16b   : > { %v915_v44 = vpop.f32.mrb[4].mxu0  ;;  %3807 = vmatprep.subr.msk.bf16.mxu0 %vm4689_vm1, %v3805_v42  ;;  %v3671_v22 = vpop.f32.mrb[0].mxu1 }
 0x16c   : > { %v917_v45 = vpop.f32.mrb[5].mxu0  ;;  %3810 = vmatpush3.bf16.xpose.msk.msra.mxu0 %vm4689_vm1, %v3805_v42  ;;  %v4707_v53 = vadd.f32 %v915_v44, %v731_v32  ;;  %v967_v23 = vadd.f32 %v3671_v22, %v739_v21  ;;  %v958_v24 = vpop.f32.mrb[1].mxu1 }
 0x16d   : > { %v919_v46 = vpop.f32.mrb[6].mxu0  ;;  %v918_v48 = vadd.f32 %v917_v45, %v735_v34  ;;  %v959_v25 = vadd.f32 %v958_v24, %v739_v21  ;;  %v3672_v26 = vpop.f32.mrb[2].mxu1 }
 0x16e   : > { %v921_v47 = vpop.f32.mrb[7].mxu0  ;;  %v4713_v54 = vadd.f32 %v919_v46, %v731_v32  ;;  %v970_v27 = vadd.f32 %v3672_v26, %v739_v21  ;;  %v961_v32 = vpop.f32.mrb[3].mxu1 }
 0x16f   : > { %v922_v49 = vadd.f32 %v921_v47, %v735_v34  ;;  %v962_v33 = vadd.f32 %v961_v32, %v739_v21 }
 0x170   : > { %v3821_v34 = vpack.c.bf16 %v970_v27, %v967_v23  ;;  %v4761_v62 = vpack.i.bf16 %v970_v27, %v967_v23 }
 0x171   : > { %v3811_v50 = vpack.c.bf16 %v922_v49, %v918_v48  ;;  %v4699_v51 = vpack.i.bf16 %v922_v49, %v918_v48  ;;  %v3817_v36 = vpack.c.bf16 %v962_v33, %v959_v25 }
 0x173   : > { %3813 = vmatprep.subr.msk.bf16.mxu0 %vm4689_vm1, %v3811_v50  ;;  %3818 = vmatprep.subr.bf16.mxu1 %v3817_v36 }
 0x174   : > { %3816 = vmatpush3.bf16.xpose.msk.msra.mxu0 %vm4689_vm1, %v3811_v50  ;;  %3820 = vmatpush3.bf16.msra.mxu1 %v3817_v36 }
 0x175   : > { %3822 = vmatprep.subr.bf16.mxu1 %v3821_v34 }
 0x178   : > { %3824 = vmatpush3.bf16.msra.mxu1 %v3821_v34 }
 0x17b   : > { %3682 = vmatmul.mubr.msk.f32.vlgmr.msra.gmra.mrb[8].mxu0 %vm973_vm0, %v4705_v52 }
 0x17c   : > { %3684 = vmatprep.mubr.msk.f32.mxu0 %vm973_vm0, %v4707_v53 }
 0x17f   : > { %3685 = vmatmul.mubr.msk.f32.gmra.mrb[10].mxu0 %vm973_vm0, %v4713_v54 }
 0x24e   : > { %v3683_v63 = vpop.f32.mrb[8].mxu0 }
 0x24f   : > { %v1064_v0 = vpop.f32.mrb[9].mxu0  ;;  %v1084_v2 = vmul.f32 0.17677669, %v3683_v63  ;;  %v4763_v63 = vpack.i.bf16 %v962_v33, %v959_v25 }
 0x250   : > { %v1083_v3 = vmul.f32 0.17677669, %v1064_v0 }
 0x251   : > { %v1088_v13 = vadd.f32 %v1084_v2, %v4733_v4 }
 0x252   : > { %v3686_v5 = vpop.f32.mrb[10].mxu0  ;;  %v1087_v7 = vadd.f32 %v1083_v3, %v4728_v1 }
 0x253   : > { %v1074_v8 = vpop.f32.mrb[11].mxu0  ;;  %v1086_v10 = vmul.f32 0.17677669, %v3686_v5  ;;  %v1094_v16 = vsel %vm973_vm0, %v1088_v13, -inf }
 0x254   : > { %v1085_v11 = vmul.f32 0.17677669, %v1074_v8  ;;  %v1091_v12 = vsel %vm973_vm0, %v1087_v7, -inf }
 0x255   : > { %1092 = vmax.xlane.f32.xlu0 %v1091_v12  ;;  %v1090_v18 = vadd.f32 %v1086_v10, %v4746_v14 }
 0x256   : > { %v1089_v15 = vadd.f32 %v1085_v11, %v4739_v9 }
 0x257   : > { %v1100_v19 = vsel %vm973_vm0, %v1090_v18, -inf }
 0x258   : > { %v1097_v17 = vsel %vm973_vm0, %v1089_v15, -inf }
 0x259   : > { %1095 = vmax.xlane.f32.xlu0 %v1094_v16  ;;  %1098 = vmax.xlane.f32.xlu1 %v1097_v17 }
 0x25d   : > { %1101 = vmax.xlane.f32.xlu1 %v1100_v19 }
 0x2e2   : > { %v1093_v37 = vpop.xlane.xlu0 %1092 }
 0x2e3   : > { %v1103_v38 = vsub.f32 %v1087_v7, %v1093_v37 }
 0x2e5   : > { %v1107_v39 = vmul.f32 1.442695, %v1103_v38 }
 0x2e6   : > { %v1096_v40 = vpop.xlane.xlu0 %1095  ;;  %v1099_v42 = vpop.xlane.xlu1 %1098 }
 0x2e7   : > { %4121 = vpow2.f32 %v1107_v39  ;;  %v1104_v30 = vsub.f32 %v1088_v13, %v1096_v40  ;;  %v1105_v44 = vsub.f32 %v1089_v15, %v1099_v42 }
 0x2e9   : > { %v1109_v45 = vmul.f32 1.442695, %v1104_v30  ;;  %v1111_v46 = vmul.f32 1.442695, %v1105_v44 }
 0x2ea   : > { %v1102_v47 = vpop.xlane.xlu1 %1101 }
 0x2eb   : > { %4123 = vpow2.f32 %v1109_v45  ;;  %v1106_v48 = vsub.f32 %v1090_v18, %v1102_v47 }
 0x2ec   : > { %4125 = vpow2.f32 %v1111_v46 }
 0x2ed   : > { %v1113_v49 = vmul.f32 1.442695, %v1106_v48 }
 0x2ef   : > { %4127 = vpow2.f32 %v1113_v49 }
 0x2f1   : > { %v4122_v50 = vpop.eup %4121 }
 0x2f2   : > { %v1115_v55 = vsel %vm973_vm0, %v4122_v50, 0.0 }
 0x2f3   : > { %1116 = vadd.xlane.f32.xlu0 %v1115_v55 }
 0x2f5   : > { %v4124_v56 = vpop.eup %4123 }
 0x2f6   : > { %v4126_v57 = vpop.eup %4125  ;;  %v1118_v58 = vsel %vm973_vm0, %v4124_v56, 0.0 }
 0x2f7   : > { %1119 = vadd.xlane.f32.xlu1 %v1118_v58  ;;  %v1121_v59 = vsel %vm973_vm0, %v4126_v57, 0.0 }
 0x2f8   : > { %1122 = vadd.xlane.f32.xlu0 %v1121_v59 }
 0x2f9   : > { %v4128_v60 = vpop.eup %4127 }
 0x2fa   : > { %v1124_v61 = vsel %vm973_vm0, %v4128_v60, 0.0 }
 0x2fb   : > { %1125 = vadd.xlane.f32.xlu1 %v1124_v61 }
 0x30c   : > { %3947 = vrot.lane.b32.xlu1 %v4699_v51, %s4344_s15 }
 0x30e   : > { %3942 = vrot.lane.b32.xlu0 %v4693_v43, %s4344_s15 }
 0x310   : > { %3952 = vrot.lane.b32.xlu1 %v4693_v43, %s4345_s3 }
 0x312   : > { %1238 = vrot.lane.b32.xlu0 %v4705_v52, %s4344_s15 }
 0x314   : > { %1236 = vrot.lane.b32.xlu1 %v4683_v35, %s4344_s15 }
 0x316   : > { %1240 = vrot.lane.b32.xlu0 %v4707_v53, %s4344_s15 }
 0x318   : > { %3957 = vrot.lane.b32.xlu1 %v4699_v51, %s4345_s3 }
 0x31a   : > { %1539 = vrot.lane.b32.xlu0 %v4683_v35, %s4345_s3 }
 0x31c   : > { %1242 = vrot.lane.b32.xlu1 %v4713_v54, %s4344_s15 }
 0x31e   : > { %1543 = vrot.lane.b32.xlu0 %v4707_v53, %s4345_s3 }
 0x320   : > { %1541 = vrot.lane.b32.xlu1 %v4705_v52, %s4345_s3 }
 0x324   : > { %1545 = vrot.lane.b32.xlu1 %v4713_v54, %s4345_s3 }
 0x380   : > { %v1117_v0 = vpop.xlane.xlu0 %1116 }
 0x381   : > { %4129 = vrcp.f32 %v1117_v0 }
 0x384   : > { %v1120_v2 = vpop.xlane.xlu1 %1119 }
 0x385   : > { %v1123_v3 = vpop.xlane.xlu0 %1122  ;;  %4131 = vrcp.f32 %v1120_v2 }
 0x386   : > { %4133 = vrcp.f32 %v1123_v3 }
 0x388   : > { %v1126_v5 = vpop.xlane.xlu1 %1125 }
 0x389   : > { %v3943_v7 = vpop.permute.xlu0 %3942  ;;  %4135 = vrcp.f32 %v1126_v5 }
 0x38a   : > { %v3945_v8 = vunpack.i.h.bf16 %v3943_v7  ;;  %v3944_v10 = vunpack.i.l.bf16 %v3943_v7 }
 0x38b   : > { %v4130_v11 = vpop.eup %4129 }
 0x38c   : > { %v3825_v12 = vpack.c.bf16 %v3945_v8, %v3944_v10  ;;  %v3948_v13 = vpop.permute.xlu1 %3947  ;;  %v1131_v15 = vmul.f32 %v4130_v11, %v4122_v50 }
 0x38d   : > { %v3950_v16 = vunpack.i.h.bf16 %v3948_v13  ;;  %v3949_v17 = vunpack.i.l.bf16 %v3948_v13  ;;  %v1239_v34 = vpop.permute.xlu0 %1238 }
 0x38e   : > { %3827 = vmatprep.subr.msk.bf16.mxu1 %vm4689_vm1, %v3825_v12  ;;  %3695 = vmatprep.mubr.msk.f32.mxu1 %vm973_vm0, %v1131_v15 }
 0x38f   : > { %v4132_v18 = vpop.eup %4131  ;;  %v3831_v24 = vpack.c.bf16 %v3950_v16, %v3949_v17 }
 0x390   : > { %v4134_v19 = vpop.eup %4133  ;;  %v1132_v21 = vmul.f32 %v4132_v18, %v4124_v56  ;;  %v3953_v22 = vpop.permute.xlu1 %3952 }
 0x391   : > { %v1133_v23 = vmul.f32 %v4134_v19, %v4126_v57  ;;  %v3955_v32 = vunpack.i.h.bf16 %v3953_v22  ;;  %v3954_v33 = vunpack.i.l.bf16 %v3953_v22  ;;  %v1241_v40 = vpop.permute.xlu0 %1240 }
 0x392   : > { %3696 = vmatmul.mubr.msk.f32.vlgmr.msra.gmra.mrb[4].mxu1 %vm973_vm0, %v1132_v21 }
 0x393   : > { %v4136_v25 = vpop.eup %4135  ;;  %3830 = vmatpush3.bf16.xpose.msk.msra.mxu1 %vm4689_vm1, %v3825_v12  ;;  %3698 = vmatprep.mubr.msk.f32.mxu1 %vm973_vm0, %v1133_v23  ;;  %v3845_v36 = vpack.c.bf16 %v3955_v32, %v3954_v33 }
 0x394   : > { %3833 = vmatprep.subr.msk.bf16.mxu1 %vm4689_vm1, %v3831_v24  ;;  %v1134_v26 = vmul.f32 %v4136_v25, %v4128_v60  ;;  %v1237_v27 = vpop.permute.xlu1 %1236 }
 0x395   : > { %v1540_v44 = vpop.permute.xlu0 %1539 }
 0x396   : > { %3699 = vmatmul.mubr.msk.f32.gmra.mrb[6].mxu1 %vm973_vm0, %v1134_v26 }
 0x397   : > { %3709 = vmatprep.mubr.msk.f32.mxu1 %vm973_vm0, %v1237_v27 }
 0x398   : > { %v3958_v37 = vpop.permute.xlu1 %3957 }
 0x399   : > { %v3960_v38 = vunpack.i.h.bf16 %v3958_v37  ;;  %v3959_v39 = vunpack.i.l.bf16 %v3958_v37  ;;  %v1544_v46 = vpop.permute.xlu0 %1543 }
 0x39b   : > { %3836 = vmatpush3.bf16.xpose.msk.msra.mxu1 %vm4689_vm1, %v3831_v24  ;;  %v3851_v42 = vpack.c.bf16 %v3960_v38, %v3959_v39 }
 0x39c   : > { %3847 = vmatprep.subr.msk.bf16.mxu1 %vm4689_vm1, %v3845_v36  ;;  %v1243_v30 = vpop.permute.xlu1 %1242 }
 0x3a0   : > { %v1542_v45 = vpop.permute.xlu1 %1541 }
 0x3a2   : > { %3710 = vmatmul.mubr.msk.f32.vlgmr.msra.gmra.mrb[8].mxu1 %vm973_vm0, %v1239_v34 }
 0x3a3   : > { %3712 = vmatprep.mubr.msk.f32.mxu1 %vm973_vm0, %v1241_v40  ;;  %3850 = vmatpush3.bf16.xpose.msk.msra.mxu1 %vm4689_vm1, %v3845_v36 }
 0x3a4   : > { %3853 = vmatprep.subr.msk.bf16.mxu1 %vm4689_vm1, %v3851_v42  ;;  %v1546_v47 = vpop.permute.xlu1 %1545 }
 0x3a6   : > { %3713 = vmatmul.mubr.msk.f32.gmra.mrb[10].mxu1 %vm973_vm0, %v1243_v30 }
 0x3a7   : > { %3737 = vmatprep.mubr.msk.f32.mxu1 %vm973_vm0, %v1540_v44 }
 0x3ab   : > { %3856 = vmatpush3.bf16.xpose.msk.msra.mxu1 %vm4689_vm1, %v3851_v42 }
 0x3b2   : > { %3738 = vmatmul.mubr.msk.f32.vlgmr.msra.gmra.mrb[12].mxu1 %vm973_vm0, %v1542_v45 }
 0x3b3   : > { %3740 = vmatprep.mubr.msk.f32.mxu1 %vm973_vm0, %v1544_v46 }
 0x3b6   : > { %3741 = vmatmul.mubr.msk.f32.gmra.mrb[14].mxu1 %vm973_vm0, %v1546_v47 }
 0x465   : > { %v3697_v48 = vpop.f32.mrb[4].mxu1 }
 0x466   : > { %1233 = vst.msk [vmem:[#allocation2 + $0x8] sm:$0xff] %vm973_vm0, %v3697_v48  ;;  %v1213_v49 = vpop.f32.mrb[5].mxu1 }
 0x467   : > { %1232 = vst.msk [vmem:[#allocation2] sm:$0xff] %vm973_vm0, %v1213_v49 }
 0x469   : > { %v3700_v50 = vpop.f32.mrb[6].mxu1 }
 0x46a   : > { %1235 = vst.msk [vmem:[#allocation2 + $0x18] sm:$0xff] %vm973_vm0, %v3700_v50  ;;  %v1223_v55 = vpop.f32.mrb[7].mxu1 }
 0x46b   : > { %1234 = vst.msk [vmem:[#allocation2 + $0x10] sm:$0xff] %vm973_vm0, %v1223_v55 }
 0x475   : > { %v4821_v56 = vpop.f32.mrb[8].mxu1 }
 0x476   : > { %v1334_v57 = vpop.f32.mrb[9].mxu1  ;;  %v1354_v47 = vmul.f32 0.17677669, %v4821_v56 }
 0x479   : > { %v3714_v58 = vpop.f32.mrb[10].mxu1 }
 0x47a   : > { %v1344_v59 = vpop.f32.mrb[11].mxu1  ;;  %v1356_v48 = vmul.f32 0.17677669, %v3714_v58 }
 0x47b   : > { %v1355_v45 = vmul.f32 0.17677669, %v1344_v59 }
 0x47d   : > { %v4870_v49 = vadd.f32 %v1355_v45, %v4739_v9 }
 0x485   : > { %v3739_v60 = vpop.f32.mrb[12].mxu1 }
 0x486   : > { %v1657_v61 = vmul.f32 0.17677669, %v3739_v60  ;;  %v1637_v0 = vpop.f32.mrb[13].mxu1 }
 0x487   : > { %v1656_v2 = vmul.f32 0.17677669, %v1637_v0 }
 0x488   : > { %v1661_v3 = vadd.f32 %v1657_v61, %v4733_v4 }
 0x489   : > { %v3742_v5 = vpop.f32.mrb[14].mxu1  ;;  %v1660_v7 = vadd.f32 %v1656_v2, %v4728_v1 }
 0x48a   : > { %v1647_v8 = vpop.f32.mrb[15].mxu1  ;;  %v1667_v10 = vsel %vm973_vm0, %v1661_v3, -inf  ;;  %v1659_v11 = vmul.f32 0.17677669, %v3742_v5 }
 0x48b   : > { %v1658_v12 = vmul.f32 0.17677669, %v1647_v8  ;;  %1668 = vmax.xlane.f32.xlu1 %v1667_v10  ;;  %v1664_v13 = vsel %vm973_vm0, %v1660_v7, -inf }
 0x48c   : > { %1665 = vmax.xlane.f32.xlu0 %v1664_v13  ;;  %v1663_v17 = vadd.f32 %v1659_v11, %v4746_v14 }
 0x48d   : > { %v1662_v15 = vadd.f32 %v1658_v12, %v4739_v9 }
 0x48e   : > { %v1673_v18 = vsel %vm973_vm0, %v1663_v17, -inf }
 0x48f   : > { %v1670_v16 = vsel %vm973_vm0, %v1662_v15, -inf }
 0x490   : > { %1671 = vmax.xlane.f32.xlu0 %v1670_v16 }
 0x494   : > { %1674 = vmax.xlane.f32.xlu0 %v1673_v18 }
 0x518   : > { %v1669_v19 = vpop.xlane.xlu1 %1668 }
 0x519   : > { %v1677_v21 = vsub.f32 %v1661_v3, %v1669_v19  ;;  %v1666_v22 = vpop.xlane.xlu0 %1665 }
 0x51a   : > { %v1676_v23 = vsub.f32 %v1660_v7, %v1666_v22 }
 0x51b   : > { %v1682_v24 = vmul.f32 1.442695, %v1677_v21 }
 0x51c   : > { %v1680_v25 = vmul.f32 1.442695, %v1676_v23 }
 0x51d   : > { %4137 = vpow2.f32 %v1682_v24  ;;  %v1672_v34 = vpop.xlane.xlu0 %1671 }
 0x51e   : > { %4139 = vpow2.f32 %v1680_v25  ;;  %v1678_v36 = vsub.f32 %v1662_v15, %v1672_v34 }
 0x520   : > { %v1684_v37 = vmul.f32 1.442695, %v1678_v36 }
 0x521   : > { %v1675_v38 = vpop.xlane.xlu0 %1674 }
 0x522   : > { %v1679_v39 = vsub.f32 %v1663_v17, %v1675_v38  ;;  %4141 = vpow2.f32 %v1684_v37 }
 0x524   : > { %v1686_v40 = vmul.f32 1.442695, %v1679_v39 }
 0x526   : > { %4143 = vpow2.f32 %v1686_v40 }
 0x527   : > { %v4831_v26 = vpop.eup %4137 }
 0x528   : > { %v4833_v27 = vpop.eup %4139  ;;  %v1691_v32 = vsel %vm973_vm0, %v4831_v26, 0.0 }
 0x529   : > { %1692 = vadd.xlane.f32.xlu1 %v1691_v32  ;;  %v1688_v33 = vsel %vm973_vm0, %v4833_v27, 0.0 }
 0x52a   : > { %1689 = vadd.xlane.f32.xlu0 %v1688_v33 }
 0x52c   : > { %v4847_v42 = vpop.eup %4141 }
 0x52d   : > { %v1694_v30 = vsel %vm973_vm0, %v4847_v42, 0.0 }
 0x53a   : > { %3967 = vrot.lane.b32.xlu1 %v4761_v62, %s4345_s3 }
 0x53e   : > { %3972 = vrot.lane.b32.xlu1 %v4693_v43, %s4346_s24  ;;  %v4851_v43 = vpop.eup %4143 }
 0x53f   : > { %v1697_v44 = vsel %vm973_vm0, %v4851_v43, 0.0 }
 0x540   : > { %3962 = vrot.lane.b32.xlu0 %v4763_v63, %s4345_s3 }
 0x542   : > { %3977 = vrot.lane.b32.xlu1 %v4699_v51, %s4346_s24  ;;  %v1353_v51 = vmul.f32 0.17677669, %v1334_v57 }
 0x544   : > { %v4864_v46 = vadd.f32 %v1353_v51, %v4728_v1 }
 0x55f   : > { %1695 = vadd.xlane.f32.xlu0 %v1694_v30 }
 0x566   : > { %1698 = vadd.xlane.f32.xlu1 %v1697_v44 }
 0x575   : > { %1838 = vrot.lane.b32.xlu0 %v4683_v35, %s4346_s24  ;;  %v1361_v35 = vsel %vm973_vm0, %v4864_v46, -inf }
 0x577   : > { %1840 = vrot.lane.b32.xlu1 %v4705_v52, %s4346_s24  ;;  %v4873_v52 = vadd.f32 %v1354_v47, %v4733_v4 }
 0x579   : > { %1842 = vrot.lane.b32.xlu0 %v4707_v53, %s4346_s24  ;;  %v1367_v53 = vsel %vm973_vm0, %v4870_v49, -inf  ;;  %v1364_v50 = vsel %vm973_vm0, %v4873_v52, -inf }
 0x57b   : > { %1844 = vrot.lane.b32.xlu1 %v4713_v54, %s4346_s24  ;;  %v4878_v54 = vadd.f32 %v1356_v48, %v4746_v14 }
 0x57d   : > { %v1370_v55 = vsel %vm973_vm0, %v4878_v54, -inf }
 0x598   : > { %1362 = vmax.xlane.f32.xlu0 %v1361_v35 }
 0x59c   : > { %1368 = vmax.xlane.f32.xlu0 %v1367_v53 }
 0x59f   : > { %1365 = vmax.xlane.f32.xlu1 %v1364_v50 }
 0x5a0   : > { %1371 = vmax.xlane.f32.xlu0 %v1370_v55 }
 0x5b6   : > { %v1693_v56 = vpop.xlane.xlu1 %1692 }
 0x5b7   : > { %v1690_v57 = vpop.xlane.xlu0 %1689 }
 0x5b8   : > { %4145 = vrcp.f32 %v1690_v57 }
 0x5b9   : > { %4147 = vrcp.f32 %v1693_v56 }
 0x5ba   : > { %v3968_v58 = vpop.permute.xlu1 %3967 }
 0x5bb   : > { %v3963_v59 = vpop.permute.xlu0 %3962  ;;  %v3970_v60 = vunpack.i.h.bf16 %v3968_v58  ;;  %v3969_v61 = vunpack.i.l.bf16 %v3968_v58 }
 0x5bc   : > { %v3965_v0 = vunpack.i.h.bf16 %v3963_v59  ;;  %v3964_v2 = vunpack.i.l.bf16 %v3963_v59 }
 0x5bd   : > { %v3861_v7 = vpack.c.bf16 %v3970_v60, %v3969_v61 }
 0x5be   : > { %v3857_v3 = vpack.c.bf16 %v3965_v0, %v3964_v2  ;;  %v3973_v5 = vpop.permute.xlu1 %3972 }
 0x5bf   : > { %v3975_v8 = vunpack.i.h.bf16 %v3973_v5  ;;  %v3974_v10 = vunpack.i.l.bf16 %v3973_v5 }
 0x5c0   : > { %3858 = vmatprep.subr.bf16.mxu1 %v3857_v3 }
 0x5c1   : > { %3860 = vmatpush3.bf16.msra.mxu1 %v3857_v3  ;;  %v3865_v15 = vpack.c.bf16 %v3975_v8, %v3974_v10 }
 0x5c2   : > { %v4146_v11 = vpop.eup %4145  ;;  %3862 = vmatprep.subr.bf16.mxu1 %v3861_v7  ;;  %v3978_v17 = vpop.permute.xlu1 %3977 }
 0x5c3   : > { %v4148_v12 = vpop.eup %4147  ;;  %v1704_v13 = vmul.f32 %v4146_v11, %v4833_v27  ;;  %v3980_v18 = vunpack.i.h.bf16 %v3978_v17  ;;  %v3979_v19 = vunpack.i.l.bf16 %v3978_v17 }
 0x5c4   : > { %v1705_v16 = vmul.f32 %v4148_v12, %v4831_v26 }
 0x5c5   : > { %3864 = vmatpush3.bf16.msra.mxu1 %v3861_v7  ;;  %3751 = vmatprep.mubr.msk.f32.mxu1 %vm973_vm0, %v1704_v13  ;;  %v3871_v21 = vpack.c.bf16 %v3980_v18, %v3979_v19 }
 0x5c6   : > { %3867 = vmatprep.subr.msk.bf16.mxu1 %vm4689_vm1, %v3865_v15 }
 0x5c8   : > { %3752 = vmatmul.mubr.msk.f32.vlgmr.msra.gmra.mrb[16].mxu1 %vm973_vm0, %v1705_v16 }
 0x5ce   : > { %3870 = vmatpush3.bf16.xpose.msk.msra.mxu1 %vm4689_vm1, %v3865_v15 }
 0x5cf   : > { %3873 = vmatprep.subr.msk.bf16.mxu1 %vm4689_vm1, %v3871_v21 }
 0x5d6   : > { %3876 = vmatpush3.bf16.xpose.msk.msra.mxu1 %vm4689_vm1, %v3871_v21 }
 0x5ec   : > { %v1696_v22 = vpop.xlane.xlu0 %1695 }
 0x5ed   : > { %4149 = vrcp.f32 %v1696_v22 }
 0x5f0   : > { %v1839_v27 = vpop.permute.xlu0 %1838 }
 0x5f3   : > { %v1699_v23 = vpop.xlane.xlu1 %1698 }
 0x5f4   : > { %4151 = vrcp.f32 %v1699_v23  ;;  %v1843_v41 = vpop.permute.xlu0 %1842 }
 0x5f7   : > { %v4150_v24 = vpop.eup %4149  ;;  %v1841_v33 = vpop.permute.xlu1 %1840 }
 0x5f8   : > { %v1706_v25 = vmul.f32 %v4150_v24, %v4847_v42 }
 0x5fa   : > { %3754 = vmatprep.mubr.msk.f32.mxu1 %vm973_vm0, %v1706_v25 }
 0x5fb   : > { %v1845_v34 = vpop.permute.xlu1 %1844 }
 0x5fe   : > { %v4152_v26 = vpop.eup %4151 }
 0x5ff   : > { %v1707_v32 = vmul.f32 %v4152_v26, %v4851_v43 }
 0x601   : > { %3755 = vmatmul.mubr.msk.f32.gmra.mrb[18].mxu1 %vm973_vm0, %v1707_v32 }
 0x602   : > { %3765 = vmatprep.mubr.msk.f32.mxu1 %vm973_vm0, %v1839_v27 }
 0x605   : > { %3766 = vmatmul.mubr.msk.f32.vlgmr.msra.gmra.mrb[20].mxu1 %vm973_vm0, %v1841_v33 }
 0x606   : > { %3768 = vmatprep.mubr.msk.f32.mxu1 %vm973_vm0, %v1843_v41 }
 0x609   : > { %3769 = vmatmul.mubr.msk.f32.gmra.mrb[22].mxu1 %vm973_vm0, %v1845_v34 }
 0x60a   : > { %2582 = vmatprep.mubr.bf16.mxu1 %v4343_v6 }
 0x625   : > { %v1363_v38 = vpop.xlane.xlu0 %1362 }
 0x626   : > { %v1373_v30 = vsub.f32 %v4864_v46, %v1363_v38 }
 0x628   : > { %v1377_v47 = vmul.f32 1.442695, %v1373_v30 }
 0x629   : > { %v1369_v39 = vpop.xlane.xlu0 %1368 }
 0x62a   : > { %v1375_v48 = vsub.f32 %v4870_v49, %v1369_v39 }
 0x62c   : > { %v1366_v40 = vpop.xlane.xlu1 %1365  ;;  %v1381_v55 = vmul.f32 1.442695, %v1375_v48 }
 0x62d   : > { %v1374_v42 = vsub.f32 %v4873_v52, %v1366_v40  ;;  %v1372_v43 = vpop.xlane.xlu0 %1371 }
 0x62e   : > { %v1376_v51 = vsub.f32 %v4878_v54, %v1372_v43 }
 0x62f   : > { %v1379_v44 = vmul.f32 1.442695, %v1374_v42 }
 0x630   : > { %v1383_v53 = vmul.f32 1.442695, %v1376_v51 }
 0x631   : > { %4153 = vpow2.f32 %v1379_v44 }
 0x632   : > { %4155 = vpow2.f32 %v1377_v47 }
 0x633   : > { %4157 = vpow2.f32 %v1383_v53 }
 0x634   : > { %4159 = vpow2.f32 %v1381_v55 }
 0x63b   : > { %v4924_v5 = vpop.eup %4153 }
 0x63c   : > { %v4156_v7 = vpop.eup %4155  ;;  %v1388_v8 = vsel %vm973_vm0, %v4924_v5, 0.0 }
 0x63d   : > { %v4929_v10 = vpop.eup %4157  ;;  %v1385_v11 = vsel %vm973_vm0, %v4156_v7, 0.0 }
 0x69b   : > { %v4905_v36 = vpop.f32.mrb[16].mxu1 }
 0x69c   : > { %v4907_v37 = vpop.f32.mrb[17].mxu1 }
 0x6d4   : > { %v4912_v45 = vpop.f32.mrb[18].mxu1 }
 0x6d5   : > { %v4915_v35 = vpop.f32.mrb[19].mxu1 }
 0x6d8   : > { %v3767_v50 = vpop.f32.mrb[20].mxu1 }
 0x6d9   : > { %v1956_v56 = vmul.f32 0.17677669, %v3767_v50  ;;  %v1936_v52 = vpop.f32.mrb[21].mxu1 }
 0x6da   : > { %v1955_v57 = vmul.f32 0.17677669, %v1936_v52 }
 0x6db   : > { %v1960_v46 = vadd.f32 %v1956_v56, %v4733_v4 }
 0x6dc   : > { %v3770_v58 = vpop.f32.mrb[22].mxu1  ;;  %v1959_v54 = vadd.f32 %v1955_v57, %v4728_v1 }
 0x6dd   : > { %v1958_v59 = vmul.f32 0.17677669, %v3770_v58  ;;  %v1946_v60 = vpop.f32.mrb[23].mxu1  ;;  %v1966_v49 = vsel %vm973_vm0, %v1960_v46, -inf }
 0x6de   : > { %v1957_v61 = vmul.f32 0.17677669, %v1946_v60  ;;  %1967 = vmax.xlane.f32.xlu1 %v1966_v49  ;;  %v1963_v0 = vsel %vm973_vm0, %v1959_v54, -inf }
 0x6df   : > { %1964 = vmax.xlane.f32.xlu0 %v1963_v0  ;;  %v1962_v2 = vadd.f32 %v1958_v59, %v4746_v14  ;;  %v4932_v14 = vpop.eup %4159 }
 0x6e0   : > { %v1961_v3 = vadd.f32 %v1957_v61, %v4739_v9  ;;  %v1394_v9 = vsel %vm973_vm0, %v4929_v10, 0.0  ;;  %v1391_v12 = vsel %vm973_vm0, %v4932_v14, 0.0 }
 0x6e1   : > { %v1972_v4 = vsel %vm973_vm0, %v1962_v2, -inf }
 0x6e2   : > { %1973 = vmax.xlane.f32.xlu1 %v1972_v4  ;;  %v1969_v1 = vsel %vm973_vm0, %v1961_v3, -inf }
 0x6e3   : > { %1970 = vmax.xlane.f32.xlu0 %v1969_v1 }
 0x6e6   : > { %1389 = vadd.xlane.f32.xlu1 %v1388_v8 }
 0x6e7   : > { %1386 = vadd.xlane.f32.xlu0 %v1385_v11 }
 0x6ea   : > { %1395 = vadd.xlane.f32.xlu1 %v1394_v9 }
 0x6eb   : > { %1392 = vadd.xlane.f32.xlu0 %v1391_v12 }
 0x76b   : > { %v1968_v13 = vpop.xlane.xlu1 %1967 }
 0x76c   : > { %v1976_v15 = vsub.f32 %v1960_v46, %v1968_v13  ;;  %v1965_v16 = vpop.xlane.xlu0 %1964 }
 0x76d   : > { %v1975_v17 = vsub.f32 %v1959_v54, %v1965_v16 }
 0x76e   : > { %v1981_v18 = vmul.f32 1.442695, %v1976_v15 }
 0x76f   : > { %v1979_v19 = vmul.f32 1.442695, %v1975_v17  ;;  %v1974_v21 = vpop.xlane.xlu1 %1973 }
 0x770   : > { %4161 = vpow2.f32 %v1981_v18  ;;  %v1978_v22 = vsub.f32 %v1962_v2, %v1974_v21  ;;  %v1971_v23 = vpop.xlane.xlu0 %1970  ;;  %v4034_v21 = vld [vmem:[%s5264_s17 + $0x8] sm:$0xff]  }
 0x771   : > { %4163 = vpow2.f32 %v1979_v19  ;;  %v1977_v24 = vsub.f32 %v1961_v3, %v1971_v23  ;;  %v4033_v19 = vld [vmem:[%s5264_s17] sm:$0xff]   ;;  %v4036_v23 = vld [vmem:[%s5264_s17 + $0x18] sm:$0xff]  }
 0x772   : > { %v1985_v25 = vmul.f32 1.442695, %v1978_v22  ;;  %v4035_v22 = vld [vmem:[%s5264_s17 + $0x10] sm:$0xff]  }
 0x773   : > { %v1983_v26 = vmul.f32 1.442695, %v1977_v24  ;;  %v1390_v44 = vpop.xlane.xlu1 %1389 }
 0x774   : > { %4165 = vpow2.f32 %v1985_v25  ;;  %v1387_v27 = vpop.xlane.xlu0 %1386 }
 0x775   : > { %4167 = vpow2.f32 %v1983_v26  ;;  %v4037_v26 = vld [vmem:[%s5264_s17 + $0x20] sm:$0xff]  }
 0x776   : > { %4169 = vrcp.f32 %v1387_v27 }
 0x777   : > { %v1396_v51 = vpop.xlane.xlu1 %1395  ;;  %4171 = vrcp.f32 %v1390_v44 }
 0x778   : > { %v1393_v47 = vpop.xlane.xlu0 %1392 }
 0x779   : > { %4173 = vrcp.f32 %v1393_v47 }
 0x77a   : > { %v4938_v32 = vpop.eup %4161  ;;  %4175 = vrcp.f32 %v1396_v51 }
 0x77b   : > { %v4940_v33 = vpop.eup %4163  ;;  %v1990_v41 = vsel %vm973_vm0, %v4938_v32, 0.0 }
 0x77c   : > { %1991 = vadd.xlane.f32.xlu1 %v1990_v41  ;;  %v1987_v34 = vsel %vm973_vm0, %v4940_v33, 0.0 }
 0x77d   : > { %1988 = vadd.xlane.f32.xlu0 %v1987_v34 }
 0x77e   : > { %v4946_v38 = vpop.eup %4165 }
 0x77f   : > { %v4948_v39 = vpop.eup %4167  ;;  %v1996_v40 = vsel %vm973_vm0, %v4946_v38, 0.0 }
 0x780   : > { %1997 = vadd.xlane.f32.xlu1 %v1996_v40  ;;  %v1993_v42 = vsel %vm973_vm0, %v4948_v39, 0.0  ;;  %v4170_v30 = vpop.eup %4169 }
 0x781   : > { %1994 = vadd.xlane.f32.xlu0 %v1993_v42  ;;  %v1401_v43 = vmul.f32 %v4170_v30, %v4156_v7  ;;  %v4172_v0 = vpop.eup %4171 }
 0x782   : > { %v1402_v7 = vmul.f32 %v4172_v0, %v4924_v5 }
 0x783   : > { %3723 = vmatprep.mubr.msk.f32.mxu0 %vm973_vm0, %v1401_v43  ;;  %v4174_v2 = vpop.eup %4173 }
 0x784   : > { %v4176_v8 = vpop.eup %4175  ;;  %v1403_v11 = vmul.f32 %v4174_v2, %v4932_v14  ;;  %v4233_v2 = vld [vmem:[%s5260_s25] sm:$0xff] }
 0x785   : > { %v1404_v13 = vmul.f32 %v4176_v8, %v4929_v10  ;;  %v4235_v8 = vld [vmem:[%s5260_s25 + $0x10] sm:$0xff] }
 0x791   : > { %3987 = vrot.lane.b32.xlu1 %v4761_v62, %s4344_s15 }
 0x795   : > { %3992 = vrot.lane.b32.xlu1 %v4763_v63, %s4346_s24 }
 0x797   : > { %3982 = vrot.lane.b32.xlu0 %v4763_v63, %s4344_s15 }
 0x799   : > { %3997 = vrot.lane.b32.xlu1 %v4761_v62, %s4346_s24 }
 0x809   : > { %v1992_v48 = vpop.xlane.xlu1 %1991 }
 0x80a   : > { %v1989_v53 = vpop.xlane.xlu0 %1988 }
 0x80b   : > { %4177 = vrcp.f32 %v1989_v53 }
 0x80c   : > { %4179 = vrcp.f32 %v1992_v48 }
 0x80d   : > { %v1998_v50 = vpop.xlane.xlu1 %1997 }
 0x80e   : > { %v1995_v55 = vpop.xlane.xlu0 %1994 }
 0x80f   : > { %4181 = vrcp.f32 %v1995_v55 }
 0x810   : > { %4183 = vrcp.f32 %v1998_v50 }
 0x811   : > { %v3988_v56 = vpop.permute.xlu1 %3987 }
 0x812   : > { %v3983_v52 = vpop.permute.xlu0 %3982  ;;  %v3990_v57 = vunpack.i.h.bf16 %v3988_v56  ;;  %v3989_v46 = vunpack.i.l.bf16 %v3988_v56 }
 0x813   : > { %v3985_v58 = vunpack.i.h.bf16 %v3983_v52  ;;  %v3984_v54 = vunpack.i.l.bf16 %v3983_v52 }
 0x814   : > { %v3841_v62 = vpack.c.bf16 %v3990_v57, %v3989_v46 }
 0x815   : > { %v3837_v63 = vpack.c.bf16 %v3985_v58, %v3984_v54  ;;  %v3993_v59 = vpop.permute.xlu1 %3992  ;;  %v4178_v9 = vpop.eup %4177  ;;  %v3430_v54 = vld [vmem:[%s5265_s22] ss:$0 sm:$0xff]  ;;  %s5267_s22 = scalar_lea.vmem %s5222_s7, %s4566_s14 }
 0x816   : > { %v3995_v60 = vunpack.i.h.bf16 %v3993_v59  ;;  %v3994_v49 = vunpack.i.l.bf16 %v3993_v59  ;;  %v4180_v15 = vpop.eup %4179  ;;  %v2003_v16 = vmul.f32 %v4178_v9, %v4940_v33  ;;  %v4038_v33 = vld [vmem:[%s5264_s17 + $0x28] sm:$0xff]   ;;  %v4236_v9 = vld [vmem:[%s5260_s25 + $0x18] sm:$0xff] }
 0x817   : > { %3838 = vmatprep.subr.bf16.mxu0 %v3837_v63  ;;  %v2004_v14 = vmul.f32 %v4180_v15, %v4938_v32  ;;  %v4043_v15 = vld [vmem:[%s4590_s23 + $0x4] ss:$16 sps:$4 sm:$0xff]  }
 0x818   : > { %3840 = vmatpush3.bf16.msra.mxu0 %v3837_v63  ;;  %v3877_v3 = vpack.c.bf16 %v3995_v60, %v3994_v49  ;;  %2550 = vmatprep.subr.bf16.mxu1 %v4043_v15 }
 0x819   : > { %v3998_v61 = vpop.permute.xlu1 %3997  ;;  %3842 = vmatprep.subr.bf16.mxu0 %v3841_v62  ;;  %v4182_v5 = vpop.eup %4181 }
 0x81a   : > { %v4000_v4 = vunpack.i.h.bf16 %v3998_v61  ;;  %v3999_v1 = vunpack.i.l.bf16 %v3998_v61  ;;  %v4184_v17 = vpop.eup %4183  ;;  %v2005_v18 = vmul.f32 %v4182_v5, %v4948_v39  ;;  %v4040_v39 = vld [vmem:[%s5264_s17 + $0x38] sm:$0xff]  }
 0x81b   : > { %v2006_v10 = vmul.f32 %v4184_v17, %v4946_v38  ;;  %v4039_v38 = vld [vmem:[%s5264_s17 + $0x30] sm:$0xff]   ;;  %v4046_v5 = vld [vmem:[%s4590_s23 + $0xc] ss:$16 sps:$4 sm:$0xff]   ;;  %s5266_s17 = scalar_lea.vmem %s5221_s6, %s4566_s14 }
 0x81c   : > { %3844 = vmatpush3.bf16.msra.mxu0 %v3841_v62  ;;  %v3881_v12 = vpack.c.bf16 %v4000_v4, %v3999_v1  ;;  %v4234_v4 = vld [vmem:[%s5260_s25 + $0x8] sm:$0xff] }
 0x81d   : > { %3878 = vmatprep.subr.bf16.mxu0 %v3877_v3  ;;  %v4052_v17 = vld [vmem:[%s4590_s23 + $0x2c] ss:$16 sps:$4 sm:$0xff]  }
 0x81f   : > { %3724 = vmatmul.mubr.msk.f32.vlgmr.msra.gmra.mrb[12].mxu0 %vm973_vm0, %v1402_v7 }
 0x820   : > { %3726 = vmatprep.mubr.msk.f32.mxu0 %vm973_vm0, %v1403_v11  ;;  %3880 = vmatpush3.bf16.msra.mxu0 %v3877_v3 }
 0x821   : > { %3882 = vmatprep.subr.bf16.mxu0 %v3881_v12 }
 0x823   : > { %3727 = vmatmul.mubr.msk.f32.gmra.mrb[14].mxu0 %vm973_vm0, %v1404_v13  ;;  %v4041_v13 = vld [vmem:[%s4590_s23] ss:$16 sps:$4 sm:$0xff]  }
 0x824   : > { %3884 = vmatpush3.bf16.msra.mxu0 %v3881_v12  ;;  %3779 = vmatprep.mubr.msk.f32.mxu0 %vm973_vm0, %v2003_v16  ;;  %v4044_v16 = vld [vmem:[%s4590_s23 + $0x8] ss:$16 sps:$4 sm:$0xff]  }
 0x825   : > { %3785 = vmatprep.subr.bf16.mxu0 %v4033_v19  ;;  %2551 = vmatpush1.bf16.msra.mxu1 %v4041_v13 }
 0x827   : > { %3780 = vmatmul.mubr.msk.f32.vlgmr.msra.gmra.mrb[16].mxu0 %vm973_vm0, %v2004_v14  ;;  %v4049_v14 = vld [vmem:[%s4590_s23 + $0x24] ss:$16 sps:$4 sm:$0xff]  }
 0x828   : > { %3782 = vmatprep.mubr.msk.f32.mxu0 %vm973_vm0, %v2005_v18  ;;  %3786 = vmatpush3.bf16.msra.mxu0 %v4033_v19  ;;  %v4047_v18 = vld [vmem:[%s4590_s23 + $0x20] ss:$16 sps:$4 sm:$0xff]  }
 0x829   : > { %3787 = vmatprep.subr.bf16.mxu0 %v4034_v21  ;;  %2552 = vmatprep.subr.bf16.mxu1 %v4049_v14  ;;  %v3439_v14 = vld [vmem:[%s5266_s17] ss:$0 sm:$0xff] }
 0x82a   : > { %2553 = vmatpush1.bf16.msra.mxu1 %v4047_v18 }
 0x82b   : > { %3783 = vmatmul.mubr.msk.f32.gmra.mrb[18].mxu0 %vm973_vm0, %v2006_v10  ;;  %v4050_v10 = vld [vmem:[%s4590_s23 + $0x28] ss:$16 sps:$4 sm:$0xff]  }
 0x82c   : > { %3788 = vmatpush3.bf16.msra.mxu0 %v4034_v21 }
 0x82d   : > { %3789 = vmatprep.subr.bf16.mxu0 %v4035_v22 }
 0x830   : > { %3790 = vmatpush3.bf16.msra.mxu0 %v4035_v22 }
 0x831   : > { %3791 = vmatprep.subr.bf16.mxu0 %v4036_v23 }
 0x834   : > { %3792 = vmatpush3.bf16.msra.mxu0 %v4036_v23 }
 0x835   : > { %3793 = vmatprep.subr.bf16.mxu0 %v4037_v26 }
 0x838   : > { %3794 = vmatpush3.bf16.msra.mxu0 %v4037_v26 }
 0x839   : > { %3795 = vmatprep.subr.bf16.mxu0 %v4038_v33 }
 0x83c   : > { %3796 = vmatpush3.bf16.msra.mxu0 %v4038_v33 }
 0x83d   : > { %3797 = vmatprep.subr.bf16.mxu0 %v4039_v38 }
 0x840   : > { %3798 = vmatpush3.bf16.msra.mxu0 %v4039_v38 }
 0x841   : > { %3799 = vmatprep.subr.bf16.mxu0 %v4040_v39 }
 0x844   : > { %3800 = vmatpush3.bf16.msra.mxu0 %v4040_v39 }
 0x845   : > { %2603 = vmatprep.subr.bf16.mxu0 %v4046_v5 }
 0x8f2   : > { %v3725_v24 = vpop.f32.mrb[12].mxu0 }
 0x8f3   : > { %1524 = vrot.lane.b32.xlu1 %v3725_v24, %s4346_s24  ;;  %v1499_v25 = vpop.f32.mrb[13].mxu0 }
 0x8f4   : > { %1522 = vrot.lane.b32.xlu0 %v1499_v25, %s4346_s24 }
 0x8f6   : > { %v3728_v27 = vpop.f32.mrb[14].mxu0 }
 0x8f7   : > { %1528 = vrot.lane.b32.xlu1 %v3728_v27, %s4346_s24  ;;  %v1509_v32 = vpop.f32.mrb[15].mxu0 }
 0x8f8   : > { %1526 = vrot.lane.b32.xlu0 %v1509_v32, %s4346_s24 }
 0x8fa   : > { %v3781_v41 = vpop.f32.mrb[16].mxu0 }
 0x8fb   : > { %1823 = vrot.lane.b32.xlu1 %v4905_v36, %s4345_s3  ;;  %v2097_v34 = vpop.f32.mrb[17].mxu0 }
 0x8fc   : > { %1821 = vrot.lane.b32.xlu0 %v4907_v37, %s4345_s3 }
 0x8fe   : > { %v3784_v40 = vpop.f32.mrb[18].mxu0 }
 0x8ff   : > { %1827 = vrot.lane.b32.xlu1 %v4912_v45, %s4345_s3  ;;  %v2107_v42 = vpop.f32.mrb[19].mxu0 }
 0x900   : > { %1825 = vrot.lane.b32.xlu0 %v4915_v35, %s4345_s3 }
 0x903   : > { %2122 = vrot.lane.b32.xlu1 %v3781_v41, %s4344_s15 }
 0x904   : > { %2120 = vrot.lane.b32.xlu0 %v2097_v34, %s4344_s15 }
 0x907   : > { %2126 = vrot.lane.b32.xlu1 %v3784_v40, %s4344_s15 }
 0x908   : > { %2124 = vrot.lane.b32.xlu0 %v2107_v42, %s4344_s15 }
 0x965   : > { %v1525_v36 = vpop.permute.xlu1 %1524 }
 0x966   : > { %1536 = vst.msk [vmem:[#allocation2 + $0x8] sm:$0xff] %vm1534_vm2, %v1525_v36  ;;  %v1523_v37 = vpop.permute.xlu0 %1522  ;;  %v4055_v36 = vld [vmem:[%s4590_s23 + $0x44] ss:$16 sps:$4 sm:$0xff]  }
 0x967   : > { %1535 = vst.msk [vmem:[#allocation2] sm:$0xff] %vm1534_vm2, %v1523_v37  ;;  %v4058_v37 = vld [vmem:[%s4590_s23 + $0x4c] ss:$16 sps:$4 sm:$0xff]   ;;  %2554 = vmatprep.subr.bf16.mxu1 %v4055_v36 }
 0x969   : > { %v1529_v45 = vpop.permute.xlu1 %1528 }
 0x96a   : > { %1538 = vst.msk [vmem:[#allocation2 + $0x18] sm:$0xff] %vm1534_vm2, %v1529_v45  ;;  %v1527_v30 = vpop.permute.xlu0 %1526  ;;  %v4053_v45 = vld [vmem:[%s4590_s23 + $0x40] ss:$16 sps:$4 sm:$0xff]  }
 0x96b   : > { %1537 = vst.msk [vmem:[#allocation2 + $0x10] sm:$0xff] %vm1534_vm2, %v1527_v30  ;;  %v4056_v30 = vld [vmem:[%s4590_s23 + $0x48] ss:$16 sps:$4 sm:$0xff]   ;;  %2555 = vmatpush1.bf16.msra.mxu1 %v4053_v45 }
 0x96c   : > { %v4096_v45 = vld [vmem:[%s4601_s16 + $0x88] sm:$0xff]  }
 0x96d   : > { %v1824_v35 = vpop.permute.xlu1 %1823 }
 0x96e   : > { %1835 = vst.msk [vmem:[#allocation2 + $0x8] sm:$0xff] %vm1833_vm3, %v1824_v35  ;;  %v1822_v43 = vpop.permute.xlu0 %1821  ;;  %v4061_v35 = vld [vmem:[%s4590_s23 + $0x64] ss:$16 sps:$4 sm:$0xff]  }
 0x96f   : > { %1834 = vst.msk [vmem:[#allocation2] sm:$0xff] %vm1833_vm3, %v1822_v43  ;;  %v4064_v43 = vld [vmem:[%s4590_s23 + $0x6c] ss:$16 sps:$4 sm:$0xff]   ;;  %2556 = vmatprep.subr.bf16.mxu1 %v4061_v35 }
 0x971   : > { %v1828_v44 = vpop.permute.xlu1 %1827 }
 0x972   : > { %1837 = vst.msk [vmem:[#allocation2 + $0x18] sm:$0xff] %vm1833_vm3, %v1828_v44  ;;  %v1826_v51 = vpop.permute.xlu0 %1825  ;;  %v4059_v44 = vld [vmem:[%s4590_s23 + $0x60] ss:$16 sps:$4 sm:$0xff]  }
 0x973   : > { %1836 = vst.msk [vmem:[#allocation2 + $0x10] sm:$0xff] %vm1833_vm3, %v1826_v51  ;;  %v4062_v51 = vld [vmem:[%s4590_s23 + $0x68] ss:$16 sps:$4 sm:$0xff]   ;;  %2557 = vmatpush1.bf16.msra.mxu1 %v4059_v44  ;;  %v4099_v44 = vld [vmem:[%s4601_s16 + $0x10] sm:$0xff]  }
 0x975   : > { %v2123_v47 = vpop.permute.xlu1 %2122 }
 0x976   : > { %2134 = vst.msk [vmem:[#allocation2 + $0x8] sm:$0xff] %vm2132_vm4, %v2123_v47  ;;  %v2121_v48 = vpop.permute.xlu0 %2120  ;;  %v4067_v47 = vld [vmem:[%s4590_s23 + $0x84] ss:$16 sps:$4 sm:$0xff]  }
 0x977   : > { %2133 = vst.msk [vmem:[#allocation2] sm:$0xff] %vm2132_vm4, %v2121_v48  ;;  %v4070_v48 = vld [vmem:[%s4590_s23 + $0x8c] ss:$16 sps:$4 sm:$0xff]   ;;  %2558 = vmatprep.subr.bf16.mxu1 %v4067_v47 }
 0x978   : > { %v4101_v47 = vld [vmem:[%s4601_s16 + $0x58] sm:$0xff]  }
 0x979   : > { %v2127_v53 = vpop.permute.xlu1 %2126 }
 0x97a   : > { %2136 = vst.msk [vmem:[#allocation2 + $0x18] sm:$0xff] %vm2132_vm4, %v2127_v53  ;;  %v2125_v50 = vpop.permute.xlu0 %2124  ;;  %v4065_v53 = vld [vmem:[%s4590_s23 + $0x80] ss:$16 sps:$4 sm:$0xff]  }
 0x97b   : > { %2135 = vst.msk [vmem:[#allocation2 + $0x10] sm:$0xff] %vm2132_vm4, %v2125_v50  ;;  %v4068_v50 = vld [vmem:[%s4590_s23 + $0x88] ss:$16 sps:$4 sm:$0xff]   ;;  %2559 = vmatpush1.bf16.msra.mxu1 %v4065_v53 }
 0x97c   : > { %v4103_v53 = vld [vmem:[%s4601_s16 + $0x18] sm:$0xff]  }
 0x97d   : > { %v2138_v55 = vld [vmem:[#allocation2 + $0x8] sm:$0xff] }
 0x97e   : > { %v2137_v56 = vld [vmem:[#allocation2] sm:$0xff] }
 0x97f   : > { %v2141_v52 = vpack.c.bf16 %v2138_v55, %v2137_v56  ;;  %v4073_v55 = vld [vmem:[%s4590_s23 + $0xa4] ss:$16 sps:$4 sm:$0xff]   ;;  %v4076_v56 = vld [vmem:[%s4590_s23 + $0xac] ss:$16 sps:$4 sm:$0xff]  }
 0x980   : > { %2560 = vmatprep.subr.bf16.mxu1 %v4073_v55  ;;  %v4105_v55 = vld [vmem:[%s4601_s16 + $0x60] sm:$0xff]  }
 0x981   : > { %3801 = vmatprep.mubr.bf16.mxu0 %v2141_v52  ;;  %v2140_v57 = vld [vmem:[#allocation2 + $0x18] sm:$0xff]  ;;  %v4071_v52 = vld [vmem:[%s4590_s23 + $0xa0] ss:$16 sps:$4 sm:$0xff]  }
 0x982   : > { %v2139_v46 = vld [vmem:[#allocation2 + $0x10] sm:$0xff]  ;;  %2561 = vmatpush1.bf16.msra.mxu1 %v4071_v52  ;;  %v4107_v52 = vld [vmem:[%s4601_s16 + $0x20] sm:$0xff]  }
 0x983   : > { %v2142_v58 = vpack.c.bf16 %v2140_v57, %v2139_v46  ;;  %v4074_v57 = vld [vmem:[%s4590_s23 + $0xa8] ss:$16 sps:$4 sm:$0xff]   ;;  %v4079_v46 = vld [vmem:[%s4590_s23 + $0xc4] ss:$16 sps:$4 sm:$0xff]  }
 0x984   : > { %2562 = vmatprep.subr.bf16.mxu1 %v4079_v46  ;;  %v4109_v46 = vld [vmem:[%s4601_s16 + $0x68] sm:$0xff]  }
 0x985   : > { %3802 = vmatmul.mubr.bf16.vlgmr.msra.gmra.mrb[20].mxu0 %v2142_v58  ;;  %v4082_v58 = vld [vmem:[%s4590_s23 + $0xcc] ss:$16 sps:$4 sm:$0xff]  }
 0x986   : > { %2635 = vmatprep.mubr.bf16.mxu0 %v4343_v6  ;;  %2604 = vmatpush1.bf16.msra.mxu0 %v4044_v16 }
 0x987   : > { %2605 = vmatprep.subr.bf16.mxu0 %v4052_v17 }
 0x98a   : > { %2606 = vmatpush1.bf16.msra.mxu0 %v4050_v10 }
 0x98b   : > { %2607 = vmatprep.subr.bf16.mxu0 %v4058_v37 }
 0x98e   : > { %2608 = vmatpush1.bf16.msra.mxu0 %v4056_v30 }
 0x98f   : > { %2609 = vmatprep.subr.bf16.mxu0 %v4064_v43  ;;  %v4098_v43 = vld [vmem:[%s4601_s16 + $0xd0] sm:$0xff]  }
 0x992   : > { %2610 = vmatpush1.bf16.msra.mxu0 %v4062_v51  ;;  %v4100_v51 = vld [vmem:[%s4601_s16 + $0x90] sm:$0xff]  }
 0x993   : > { %2611 = vmatprep.subr.bf16.mxu0 %v4070_v48  ;;  %v4102_v48 = vld [vmem:[%s4601_s16 + $0xd8] sm:$0xff]  }
 0x996   : > { %2612 = vmatpush1.bf16.msra.mxu0 %v4068_v50  ;;  %v4104_v50 = vld [vmem:[%s4601_s16 + $0x98] sm:$0xff]  }
 0x997   : > { %2613 = vmatprep.subr.bf16.mxu0 %v4076_v56  ;;  %v4106_v56 = vld [vmem:[%s4601_s16 + $0xe0] sm:$0xff]  }
 0x99a   : > { %2614 = vmatpush1.bf16.msra.mxu0 %v4074_v57  ;;  %v4108_v57 = vld [vmem:[%s4601_s16 + $0xa0] sm:$0xff]  }
 0x99b   : > { %2615 = vmatprep.subr.bf16.mxu0 %v4082_v58  ;;  %v4110_v58 = vld [vmem:[%s4601_s16 + $0xe8] sm:$0xff]  }
 0xa58   : > { %v3803_v63 = vpop.f32.mrb[20].mxu0 }
 0xa59   : > { %v2248_v59 = vpop.f32.mrb[21].mxu0  ;;  %v2257_v61 = vadd.f32 %v3803_v63, %v3430_v54  ;;  %v4080_v63 = vld [vmem:[%s4590_s23 + $0xc8] ss:$16 sps:$4 sm:$0xff]  }
 0xa5a   : > { %v2249_v62 = vadd.f32 %v3430_v54, %v2248_v59  ;;  %v3804_v60 = vpop.f32.mrb[22].mxu0  ;;  %v4085_v59 = vld [vmem:[%s4590_s23 + $0xe4] ss:$16 sps:$4 sm:$0xff]   ;;  %2616 = vmatpush1.bf16.msra.mxu0 %v4080_v63  ;;  %v4112_v63 = vld [vmem:[%s4601_s16 + $0xa8] sm:$0xff]  }
 0xa5b   : > { %v2251_v49 = vpop.f32.mrb[23].mxu0  ;;  %v2260_v7 = vadd.f32 %v3804_v60, %v3430_v54  ;;  %v2265_v11 = vadd.f32 %v4235_v8, %v2257_v61  ;;  %v4086_v60 = vld [vmem:[%s4590_s23 + $0xe8] ss:$16 sps:$4 sm:$0xff]   ;;  %v4089_v61 = vld [vmem:[%s4601_s16 + $0x40] sm:$0xff]  }
 0xa5c   : > { %v2252_v0 = vadd.f32 %v3430_v54, %v2251_v49  ;;  %v2263_v3 = vadd.f32 %v4233_v2, %v2249_v62  ;;  %v4077_v54 = vld [vmem:[%s4590_s23 + $0xc0] ss:$16 sps:$4 sm:$0xff]   ;;  %v4088_v49 = vld [vmem:[%s4590_s23 + $0xec] ss:$16 sps:$4 sm:$0xff]  }
 0xa5d   : > { %v2266_v12 = vadd.f32 %v4236_v9, %v2260_v7  ;;  %2563 = vmatpush1.bf16.msra.mxu1 %v4077_v54  ;;  %v4083_v62 = vld [vmem:[%s4590_s23 + $0xe0] ss:$16 sps:$4 sm:$0xff]   ;;  %2617 = vmatprep.subr.bf16.mxu0 %v4088_v49  ;;  %v4111_v54 = vld [vmem:[%s4601_s16 + $0x28] sm:$0xff]  }
 0xa5e   : > { %2269 = vadd.xlane.f32.xlu0 %v2263_v3  ;;  %v2264_v1 = vadd.f32 %v4234_v4, %v2252_v0  ;;  %2564 = vmatprep.subr.bf16.mxu1 %v4085_v59  ;;  %v4090_v0 = vld [vmem:[%s4601_s16 + $0xc0] sm:$0xff]   ;;  %v4113_v59 = vld [vmem:[%s4601_s16 + $0x70] sm:$0xff]  }
 0xa5f   : > { %2618 = vmatpush1.bf16.msra.mxu0 %v4086_v60  ;;  %v4115_v60 = vld [vmem:[%s4601_s16 + $0x30] sm:$0xff]  }
 0xa60   : > { %2271 = vadd.xlane.f32.xlu1 %v2264_v1  ;;  %3625 = vmatprep.subr.bf16.mxu0 %v4090_v0  ;;  %v4116_v49 = vld [vmem:[%s4601_s16 + $0xb0] sm:$0xff]   ;;  %v4118_v0 = vld [vmem:[%s4601_s16 + $0xf8] sm:$0xff]  }
 0xa61   : > { %2565 = vmatpush1.bf16.msra.mxu1 %v4083_v62  ;;  %v4114_v62 = vld [vmem:[%s4601_s16 + $0xf0] sm:$0xff]  }
 0xa62   : > { %2273 = vadd.xlane.f32.xlu0 %v2265_v11  ;;  %3597 = vmatprep.subr.bf16.mxu1 %v4089_v61  ;;  %v4117_v61 = vld [vmem:[%s4601_s16 + $0x78] sm:$0xff]  }
 0xa66   : > { %2275 = vadd.xlane.f32.xlu0 %v2266_v12 }
 0xaeb   : > { %v2270_v19 = vpop.xlane.xlu0 %2269 }
 0xaec   : > { %v2278_v21 = vmul.f32 0.0078125, %v2270_v19 }
 0xaed   : > { %v2272_v22 = vpop.xlane.xlu1 %2271 }
 0xaee   : > { %v5027_v23 = vsub.f32 %v2263_v3, %v2278_v21  ;;  %v2279_v24 = vmul.f32 0.0078125, %v2272_v22  ;;  %v3440_v22 = vld [vmem:[%s5267_s22] ss:$0 sm:$0xff] }
 0xaef   : > { %v2274_v25 = vpop.xlane.xlu0 %2273 }
 0xaf0   : > { %v5029_v26 = vsub.f32 %v2264_v1, %v2279_v24  ;;  %v2280_v27 = vmul.f32 0.0078125, %v2274_v25  ;;  %v2286_v32 = vmul.f32 %v5027_v23, %v5027_v23 }
 0xaf2   : > { %v5033_v33 = vsub.f32 %v2265_v11, %v2280_v27  ;;  %2290 = vadd.xlane.f32.xlu0 %v2286_v32  ;;  %v2287_v41 = vmul.f32 %v5029_v26, %v5029_v26 }
 0xaf3   : > { %v2276_v34 = vpop.xlane.xlu0 %2275 }
 0xaf4   : > { %v2281_v38 = vmul.f32 0.0078125, %v2276_v34  ;;  %2292 = vadd.xlane.f32.xlu1 %v2287_v41  ;;  %v2288_v39 = vmul.f32 %v5033_v33, %v5033_v33  ;;  %v4091_v34 = vld [vmem:[%s4601_s16] sm:$0xff]  }
 0xaf6   : > { %v5039_v40 = vsub.f32 %v2266_v12, %v2281_v38  ;;  %2294 = vadd.xlane.f32.xlu0 %v2288_v39  ;;  %v4092_v38 = vld [vmem:[%s4601_s16 + $0x80] sm:$0xff]   ;;  %v4093_v39 = vld [vmem:[%s4601_s16 + $0x48] sm:$0xff]  }
 0xaf8   : > { %v2289_v42 = vmul.f32 %v5039_v40, %v5039_v40 }
 0xafa   : > { %2296 = vadd.xlane.f32.xlu1 %v2289_v42  ;;  %v4094_v42 = vld [vmem:[%s4601_s16 + $0xc8] sm:$0xff]  }
 0xb7f   : > { %v2291_v2 = vpop.xlane.xlu0 %2290 }
 0xb80   : > { %v2298_v3 = vmul.f32 0.0078125, %v2291_v2  ;;  %v4119_v2 = vld [vmem:[%s4601_s16 + $0x38] sm:$0xff]  }
 0xb81   : > { %v2293_v4 = vpop.xlane.xlu1 %2292 }
 0xb82   : > { %v2302_v1 = vadd.f32 1e-05, %v2298_v3  ;;  %v2299_v7 = vmul.f32 0.0078125, %v2293_v4  ;;  %v4120_v3 = vld [vmem:[%s4601_s16 + $0xb8] sm:$0xff]   ;;  %v2368_v4 = vld [vmem:[%s4596_s27] sm:$0xf] }
 0xb83   : > { %v2295_v8 = vpop.xlane.xlu0 %2294 }
 0xb84   : > { %4185 = vrsqrt.f32 %v2302_v1  ;;  %v2303_v11 = vadd.f32 1e-05, %v2299_v7  ;;  %v2300_v9 = vmul.f32 0.0078125, %v2295_v8  ;;  %v2384_v1 = vsub.s32 3, %v4670_v28 }
 0xb85   : > { %v2373_v7 = vrot.slane %v2368_v4, %v730_v29  ;;  %v2381_v8 = vrot.slane %v2368_v4, %v738_v20 }
 0xb86   : > { %4187 = vrsqrt.f32 %v2303_v11  ;;  %v2304_v12 = vadd.f32 1e-05, %v2300_v9  ;;  %v2377_v11 = vrot.slane %v2368_v4, %v734_v31  ;;  %v2385_v9 = vrot.slane %v2368_v4, %v2384_v1 }
 0xb87   : > { %v2297_v13 = vpop.xlane.xlu1 %2296 }
 0xb88   : > { %4189 = vrsqrt.f32 %v2304_v12  ;;  %v2301_v15 = vmul.f32 0.0078125, %v2297_v13 }
 0xb8a   : > { %v2305_v16 = vadd.f32 1e-05, %v2301_v15 }
 0xb8c   : > { %4191 = vrsqrt.f32 %v2305_v16 }
 0xb8e   : > { %v4186_v5 = vpop.eup %4185 }
 0xb8f   : > { %v2310_v17 = vmul.f32 %v4186_v5, %v5027_v23 }
 0xb90   : > { %v4188_v18 = vpop.eup %4187 }
 0xb91   : > { %v2320_v10 = vmul.f32 %v3439_v14, %v2310_v17  ;;  %v2311_v19 = vmul.f32 %v4188_v18, %v5029_v26 }
 0xb92   : > { %v4190_v21 = vpop.eup %4189 }
 0xb93   : > { %v2321_v24 = vmul.f32 %v3439_v14, %v2311_v19  ;;  %v5081_v25 = vadd.f32 %v3440_v22, %v2320_v10  ;;  %v2312_v32 = vmul.f32 %v4190_v21, %v5033_v33 }
 0xb95   : > { %v5083_v27 = vadd.f32 %v3440_v22, %v2321_v24  ;;  %v2322_v36 = vmul.f32 %v3439_v14, %v2312_v32 }
 0xb96   : > { %v4192_v41 = vpop.eup %4191 }
 0xb97   : > { %v2334_v23 = vpack.c.bf16 %v5083_v27, %v5081_v25  ;;  %v2313_v26 = vmul.f32 %v4192_v41, %v5039_v40  ;;  %v4095_v40 = vld [vmem:[%s4601_s16 + $0x8] sm:$0xff]   ;;  %v5099_v30 = vadd.f32 %v3440_v22, %v2322_v36 }
 0xb99   : > { %2583 = vmatmul.mubr.bf16.vlgmr.msra.gmra.mrb[24].mxu1 %v2334_v23  ;;  %2636 = vmatmul.mubr.bf16.vlgmr.msra.gmra.mrb[24].mxu0 %v2334_v23  ;;  %v2323_v37 = vmul.f32 %v3439_v14, %v2313_v26 }
 0xb9a   : > { %2592 = vmatprep.mubr.bf16.mxu1 %v4343_v6  ;;  %2645 = vmatprep.mubr.bf16.mxu0 %v4343_v6  ;;  %v4097_v6 = vld [vmem:[%s4601_s16 + $0x50] sm:$0xff]  }
 0xb9b   : > { %v5095_v33 = vadd.f32 %v3440_v22, %v2323_v37  ;;  %3598 = vmatpush3.bf16.msra.mxu1 %v4091_v34  ;;  %3626 = vmatpush3.bf16.msra.mxu0 %v4092_v38 }
 0xb9c   : > { %3599 = vmatprep.subr.bf16.mxu1 %v4093_v39  ;;  %3627 = vmatprep.subr.bf16.mxu0 %v4094_v42 }
 0xb9d   : > { %v2335_v35 = vpack.c.bf16 %v5095_v33, %v5099_v30 }
 0xb9f   : > { %3600 = vmatpush3.bf16.msra.mxu1 %v4095_v40  ;;  %3628 = vmatpush3.bf16.msra.mxu0 %v4096_v45 }
 0xba0   : > { %3601 = vmatprep.subr.bf16.mxu1 %v4097_v6  ;;  %3629 = vmatprep.subr.bf16.mxu0 %v4098_v43 }
 0xba1   : > { %2593 = vmatmul.mubr.bf16.gmra.mrb[28].mxu1 %v2335_v35  ;;  %2646 = vmatmul.mubr.bf16.gmra.mrb[28].mxu0 %v2335_v35 }
 0xba3   : > { %3602 = vmatpush3.bf16.msra.mxu1 %v4099_v44  ;;  %3630 = vmatpush3.bf16.msra.mxu0 %v4100_v51 }
 0xba4   : > { %3603 = vmatprep.subr.bf16.mxu1 %v4101_v47  ;;  %3631 = vmatprep.subr.bf16.mxu0 %v4102_v48 }
 0xba7   : > { %3604 = vmatpush3.bf16.msra.mxu1 %v4103_v53  ;;  %3632 = vmatpush3.bf16.msra.mxu0 %v4104_v50 }
 0xba8   : > { %3605 = vmatprep.subr.bf16.mxu1 %v4105_v55  ;;  %3633 = vmatprep.subr.bf16.mxu0 %v4106_v56 }
 0xbab   : > { %3606 = vmatpush3.bf16.msra.mxu1 %v4107_v52  ;;  %3634 = vmatpush3.bf16.msra.mxu0 %v4108_v57 }
 0xbac   : > { %3607 = vmatprep.subr.bf16.mxu1 %v4109_v46  ;;  %3635 = vmatprep.subr.bf16.mxu0 %v4110_v58 }
 0xbaf   : > { %3608 = vmatpush3.bf16.msra.mxu1 %v4111_v54  ;;  %3636 = vmatpush3.bf16.msra.mxu0 %v4112_v63 }
 0xbb0   : > { %3609 = vmatprep.subr.bf16.mxu1 %v4113_v59  ;;  %3637 = vmatprep.subr.bf16.mxu0 %v4114_v62 }
 0xbb3   : > { %3610 = vmatpush3.bf16.msra.mxu1 %v4115_v60  ;;  %3638 = vmatpush3.bf16.msra.mxu0 %v4116_v49 }
 0xbb4   : > { %3611 = vmatprep.subr.bf16.mxu1 %v4117_v61  ;;  %3639 = vmatprep.subr.bf16.mxu0 %v4118_v0 }
 0xbb7   : > { %3612 = vmatpush3.bf16.msra.mxu1 %v4119_v2  ;;  %3640 = vmatpush3.bf16.msra.mxu0 %v4120_v3 }
 0xc6c   : > { %v2584_v12 = vpop.f32.mrb[24].mxu1  ;;  %v2637_v13 = vpop.f32.mrb[24].mxu0 }
 0xc6d   : > { %v2585_v15 = vadd.f32 %v2584_v12, %v2373_v7  ;;  %v2638_v16 = vadd.f32 %v2637_v13, %v2381_v8  ;;  %v2586_v5 = vpop.f32.mrb[25].mxu1  ;;  %v2639_v14 = vpop.f32.mrb[25].mxu0 }
 0xc6e   : > { %v2587_v17 = vadd.f32 %v2586_v5, %v2377_v11  ;;  %v2640_v18 = vadd.f32 %v2639_v14, %v2385_v9  ;;  %v2588_v10 = vpop.f32.mrb[26].mxu1  ;;  %v2641_v19 = vpop.f32.mrb[26].mxu0 }
 0xc6f   : > { %v2672_v21 = vmul.f32 0.70710677, %v2585_v15  ;;  %v2674_v22 = vmul.f32 0.70710677, %v2638_v16  ;;  %v2589_v20 = vadd.f32 %v2588_v10, %v2373_v7  ;;  %v5135_v32 = vadd.f32 %v2641_v19, %v2381_v8  ;;  %v2590_v28 = vpop.f32.mrb[27].mxu1  ;;  %v2643_v31 = vpop.f32.mrb[27].mxu0 }
 0xc70   : > { %v2673_v29 = vmul.f32 0.70710677, %v2587_v17  ;;  %v2675_v24 = vmul.f32 0.70710677, %v2640_v18  ;;  %v2591_v41 = vadd.f32 %v2590_v28, %v2377_v11  ;;  %v5137_v23 = vadd.f32 %v2643_v31, %v2385_v9 }
 0xc71   : > { %4193 = verf.f32 %v2672_v21  ;;  %v2676_v26 = vmul.f32 0.70710677, %v2589_v20  ;;  %v2678_v34 = vmul.f32 0.70710677, %v5135_v32  ;;  %v2656_v60 = vmul.f32 0.5, %v2585_v15 }
 0xc72   : > { %4195 = verf.f32 %v2674_v22  ;;  %v2677_v38 = vmul.f32 0.70710677, %v2591_v41  ;;  %v2679_v42 = vmul.f32 0.70710677, %v5137_v23  ;;  %v2658_v49 = vmul.f32 0.5, %v2638_v16 }
 0xc73   : > { %4197 = verf.f32 %v2673_v29  ;;  %v2657_v3 = vmul.f32 0.5, %v2587_v17  ;;  %v2662_v14 = vmul.f32 0.5, %v5135_v32  ;;  %v2661_v17 = vmul.f32 0.5, %v2591_v41 }
 0xc74   : > { %4199 = verf.f32 %v2675_v24  ;;  %v2594_v39 = vpop.f32.mrb[28].mxu1  ;;  %v2647_v37 = vpop.f32.mrb[28].mxu0 }
 0xc75   : > { %4201 = verf.f32 %v2676_v26  ;;  %v5141_v36 = vadd.f32 %v2594_v39, %v2373_v7  ;;  %v2596_v40 = vpop.f32.mrb[29].mxu1  ;;  %v5143_v45 = vadd.f32 %v2647_v37, %v2381_v8  ;;  %v2649_v6 = vpop.f32.mrb[29].mxu0 }
 0xc76   : > { %4203 = verf.f32 %v2678_v34  ;;  %v5145_v35 = vadd.f32 %v2596_v40, %v2377_v11  ;;  %v2598_v43 = vpop.f32.mrb[30].mxu1  ;;  %v5148_v51 = vadd.f32 %v2649_v6, %v2385_v9  ;;  %v2651_v47 = vpop.f32.mrb[30].mxu0 }
 0xc77   : > { %4205 = verf.f32 %v2677_v38  ;;  %v2680_v44 = vmul.f32 0.70710677, %v5141_v36  ;;  %v2600_v48 = vpop.f32.mrb[31].mxu1  ;;  %v2682_v53 = vmul.f32 0.70710677, %v5143_v45  ;;  %v2653_v50 = vpop.f32.mrb[31].mxu0  ;;  %v2599_v52 = vadd.f32 %v2598_v43, %v2373_v7 }
 0xc78   : > { %4207 = verf.f32 %v2679_v42  ;;  %v2681_v55 = vmul.f32 0.70710677, %v5145_v35  ;;  %v2683_v56 = vmul.f32 0.70710677, %v5148_v51  ;;  %v5153_v57 = vadd.f32 %v2651_v47, %v2381_v8 }
 0xc79   : > { %4209 = verf.f32 %v2680_v44  ;;  %v5155_v46 = vadd.f32 %v2600_v48, %v2377_v11  ;;  %v2684_v63 = vmul.f32 0.70710677, %v2599_v52  ;;  %v5157_v59 = vadd.f32 %v2653_v50, %v2385_v9 }
 0xc7a   : > { %4211 = verf.f32 %v2682_v53  ;;  %v2686_v61 = vmul.f32 0.70710677, %v5153_v57  ;;  %v2659_v8 = vmul.f32 0.5, %v2640_v18  ;;  %v2660_v11 = vmul.f32 0.5, %v2589_v20 }
 0xc7b   : > { %v4194_v58 = vpop.eup %4193  ;;  %4213 = verf.f32 %v2681_v55  ;;  %v2685_v4 = vmul.f32 0.70710677, %v5155_v46  ;;  %v2687_v15 = vmul.f32 0.70710677, %v5157_v59  ;;  %v2663_v20 = vmul.f32 0.5, %v5137_v23 }
 0xc7c   : > { %v4196_v54 = vpop.eup %4195  ;;  %4215 = verf.f32 %v2683_v56  ;;  %v2704_v2 = vadd.f32 1.0, %v4194_v58  ;;  %v2664_v48 = vmul.f32 0.5, %v5141_v36  ;;  %v2666_v50 = vmul.f32 0.5, %v5143_v45 }
 0xc7d   : > { %v4198_v62 = vpop.eup %4197  ;;  %4217 = verf.f32 %v2684_v63  ;;  %v2706_v7 = vadd.f32 1.0, %v4196_v54  ;;  %v2668_v56 = vmul.f32 0.5, %v2599_v52  ;;  %v2665_v63 = vmul.f32 0.5, %v5145_v35 }
 0xc7e   : > { %v4200_v0 = vpop.eup %4199  ;;  %4219 = verf.f32 %v2686_v61  ;;  %v2705_v9 = vadd.f32 1.0, %v4198_v62  ;;  %v2720_v21 = vmul.f32 %v2704_v2, %v2656_v60  ;;  %v2670_v62 = vmul.f32 0.5, %v5153_v57 }
 0xc7f   : > { %v4202_v1 = vpop.eup %4201  ;;  %4221 = verf.f32 %v2685_v4  ;;  %v2707_v5 = vadd.f32 1.0, %v4200_v0  ;;  %v2722_v18 = vmul.f32 %v2706_v7, %v2658_v49  ;;  %v2669_v49 = vmul.f32 0.5, %v5155_v46 }
 0xc80   : > { %v4204_v12 = vpop.eup %4203  ;;  %v2708_v13 = vadd.f32 1.0, %v4202_v1  ;;  %4223 = verf.f32 %v2687_v15  ;;  %v2721_v26 = vmul.f32 %v2705_v9, %v2657_v3  ;;  %v2667_v52 = vmul.f32 0.5, %v5148_v51  ;;  %v3473_v51 = vld [vmem:[%s664_s18] ss:$0 sm:$0xff] }
 0xc81   : > { %v4206_v16 = vpop.eup %4205  ;;  %v2710_v10 = vadd.f32 1.0, %v4204_v12  ;;  %v2723_v42 = vmul.f32 %v2707_v5, %v2659_v8  ;;  %v2671_v1 = vmul.f32 0.5, %v5157_v59 }
 0xc82   : > { %v4208_v19 = vpop.eup %4207  ;;  %v2724_v22 = vmul.f32 %v2708_v13, %v2660_v11  ;;  %v2709_v29 = vadd.f32 1.0, %v4206_v16 }
 0xc83   : > { %v2726_v24 = vmul.f32 %v2710_v10, %v2662_v14  ;;  %v2711_v28 = vadd.f32 1.0, %v4208_v19  ;;  %v4210_v31 = vpop.eup %4209 }
 0xc84   : > { %v2736_v34 = vpack.c.bf16 %v2724_v22, %v2720_v21  ;;  %v2725_v38 = vmul.f32 %v2709_v29, %v2661_v17  ;;  %v4212_v39 = vpop.eup %4211  ;;  %v2712_v43 = vadd.f32 1.0, %v4210_v31 }
 0xc85   : > { %v2738_v37 = vpack.c.bf16 %v2726_v24, %v2722_v18  ;;  %v2727_v32 = vmul.f32 %v2711_v28, %v2663_v20  ;;  %v4214_v40 = vpop.eup %4213  ;;  %v2714_v53 = vadd.f32 1.0, %v4212_v39 }
 0xc86   : > { %v2737_v41 = vpack.c.bf16 %v2725_v38, %v2721_v26  ;;  %v4216_v6 = vpop.eup %4215  ;;  %v2713_v55 = vadd.f32 1.0, %v4214_v40  ;;  %v2728_v36 = vmul.f32 %v2712_v43, %v2664_v48 }
 0xc87   : > { %v2739_v44 = vpack.c.bf16 %v2727_v32, %v2723_v42  ;;  %v4218_v47 = vpop.eup %4217  ;;  %v2715_v61 = vadd.f32 1.0, %v4216_v6  ;;  %v2730_v45 = vmul.f32 %v2714_v53, %v2666_v50 }
 0xc88   : > { %3039 = vmatprep.mubr.bf16.mxu1 %v2737_v41  ;;  %v4220_v23 = vpop.eup %4219  ;;  %v2716_v58 = vadd.f32 1.0, %v4218_v47  ;;  %v2729_v7 = vmul.f32 %v2713_v55, %v2665_v63 }
 0xc89   : > { %3088 = vmatprep.mubr.bf16.mxu0 %v2739_v44  ;;  %3040 = vmatmul.mubr.bf16.vlgmr.msra.gmra.mrb[32].mxu1 %v2736_v34  ;;  %v4222_v54 = vpop.eup %4221  ;;  %v2718_v60 = vadd.f32 1.0, %v4220_v23  ;;  %v2731_v12 = vmul.f32 %v2715_v61, %v2667_v52 }
 0xc8a   : > { %3089 = vmatmul.mubr.bf16.vlgmr.msra.gmra.mrb[32].mxu0 %v2738_v37  ;;  %v2732_v0 = vmul.f32 %v2716_v58, %v2668_v56  ;;  %v2717_v2 = vadd.f32 1.0, %v4222_v54  ;;  %v4224_v3 = vpop.eup %4223 }
 0xc8b   : > { %v2734_v4 = vmul.f32 %v2718_v60, %v2670_v62  ;;  %v2719_v8 = vadd.f32 1.0, %v4224_v3 }
 0xc8c   : > { %v2733_v35 = vmul.f32 %v2717_v2, %v2669_v49  ;;  %v2740_v57 = vpack.c.bf16 %v2732_v0, %v2728_v36 }
 0xc8d   : > { %v2742_v11 = vpack.c.bf16 %v2734_v4, %v2730_v45  ;;  %v2735_v46 = vmul.f32 %v2719_v8, %v2671_v1 }
 0xc8e   : > { %v2741_v9 = vpack.c.bf16 %v2733_v35, %v2729_v7 }
 0xc8f   : > { %v2743_v13 = vpack.c.bf16 %v2735_v46, %v2731_v12 }
 0xc90   : > { %3047 = vmatprep.mubr.bf16.mxu1 %v2741_v9 }
 0xc91   : > { %3048 = vmatmul.mubr.bf16.gmra.mrb[36].mxu1 %v2740_v57  ;;  %3096 = vmatprep.mubr.bf16.mxu0 %v2743_v13 }
 0xc92   : > { %3097 = vmatmul.mubr.bf16.gmra.mrb[36].mxu0 %v2742_v11 }
 0xd5c   : > { %v3613_v15 = vpop.f32.mrb[32].mxu1 }
 0xd5d   : > { %v3641_v16 = vpop.f32.mrb[32].mxu0  ;;  %v3614_v59 = vpop.f32.mrb[33].mxu1 }
 0xd5e   : > { %v3615_v5 = vadd.f32 %v3614_v59, %v3613_v15  ;;  %v3642_v14 = vpop.f32.mrb[33].mxu0  ;;  %v3616_v10 = vpop.f32.mrb[34].mxu1 }
 0xd5f   : > { %v3643_v17 = vadd.f32 %v3642_v14, %v3641_v16  ;;  %v3644_v19 = vpop.f32.mrb[34].mxu0  ;;  %v3617_v21 = vpop.f32.mrb[35].mxu1  ;;  %v3507_v14 = vld [vmem:[%s670_s8] ss:$0 sm:$0xff] }
 0xd60   : > { %v3042_v22 = vadd.f32 %v3615_v5, %v3473_v51  ;;  %v3618_v29 = vadd.f32 %v3617_v21, %v3616_v10  ;;  %v3645_v18 = vpop.f32.mrb[35].mxu0 }
 0xd61   : > { %v3646_v24 = vadd.f32 %v3645_v18, %v3644_v19 }
 0xd62   : > { %v3091_v20 = vadd.f32 %v3643_v17, %v3042_v22  ;;  %v3045_v28 = vadd.f32 %v3618_v29, %v3473_v51 }
 0xd64   : > { %v3094_v31 = vadd.f32 %v3646_v24, %v3045_v28  ;;  %v3105_v26 = vadd.f32 %v3091_v20, %v5081_v25  ;;  %v3619_v34 = vpop.f32.mrb[36].mxu1 }
 0xd65   : > { %v3620_v38 = vpop.f32.mrb[37].mxu1  ;;  %v3647_v42 = vpop.f32.mrb[36].mxu0 }
 0xd66   : > { %3111 = vadd.xlane.f32.xlu0 %v3105_v26  ;;  %v3106_v39 = vadd.f32 %v3094_v31, %v5083_v27  ;;  %v3621_v37 = vadd.f32 %v3620_v38, %v3619_v34  ;;  %v3622_v32 = vpop.f32.mrb[38].mxu1  ;;  %v3648_v40 = vpop.f32.mrb[37].mxu0 }
 0xd67   : > { %v3623_v41 = vpop.f32.mrb[39].mxu1  ;;  %v3649_v43 = vadd.f32 %v3648_v40, %v3647_v42  ;;  %v3650_v44 = vpop.f32.mrb[38].mxu0 }
 0xd68   : > { %3113 = vadd.xlane.f32.xlu1 %v3106_v39  ;;  %v3050_v6 = vadd.f32 %v3621_v37, %v3473_v51  ;;  %v3624_v47 = vadd.f32 %v3623_v41, %v3622_v32  ;;  %v3651_v48 = vpop.f32.mrb[39].mxu0 }
 0xd69   : > { %v3652_v50 = vadd.f32 %v3651_v48, %v3650_v44 }
 0xd6a   : > { %v3099_v53 = vadd.f32 %v3649_v43, %v3050_v6  ;;  %v3053_v23 = vadd.f32 %v3624_v47, %v3473_v51  ;;  %v3506_v51 = vld [vmem:[%s667_s4] ss:$0 sm:$0xff] }
 0xd6c   : > { %v3102_v25 = vadd.f32 %v3652_v50, %v3053_v23  ;;  %v3107_v55 = vadd.f32 %v3099_v53, %v5099_v30 }
 0xd6e   : > { %3115 = vadd.xlane.f32.xlu0 %v3107_v55  ;;  %v3108_v27 = vadd.f32 %v3102_v25, %v5095_v33 }
 0xd70   : > { %3117 = vadd.xlane.f32.xlu1 %v3108_v27 }
 0xdf3   : > { %v3112_v56 = vpop.xlane.xlu0 %3111 }
 0xdf4   : > { %v3119_v58 = vmul.f32 0.0078125, %v3112_v56 }
 0xdf5   : > { %v3114_v54 = vpop.xlane.xlu1 %3113 }
 0xdf6   : > { %v3123_v63 = vsub.f32 %v3105_v26, %v3119_v58  ;;  %v3120_v62 = vmul.f32 0.0078125, %v3114_v54 }
 0xdf8   : > { %v3124_v60 = vsub.f32 %v3106_v39, %v3120_v62  ;;  %v3127_v49 = vmul.f32 %v3123_v63, %v3123_v63 }
 0xdfa   : > { %3131 = vadd.xlane.f32.xlu0 %v3127_v49  ;;  %v3128_v36 = vmul.f32 %v3124_v60, %v3124_v60 }
 0xdfb   : > { %v3116_v61 = vpop.xlane.xlu0 %3115 }
 0xdfc   : > { %3133 = vadd.xlane.f32.xlu1 %v3128_v36  ;;  %v3121_v0 = vmul.f32 0.0078125, %v3116_v61 }
 0xdfd   : > { %v3118_v2 = vpop.xlane.xlu1 %3117 }
 0xdfe   : > { %v3125_v3 = vsub.f32 %v3107_v55, %v3121_v0  ;;  %v3122_v45 = vmul.f32 0.0078125, %v3118_v2 }
 0xe00   : > { %v3126_v30 = vsub.f32 %v3108_v27, %v3122_v45  ;;  %v3129_v52 = vmul.f32 %v3125_v3, %v3125_v3 }
 0xe02   : > { %3135 = vadd.xlane.f32.xlu0 %v3129_v52  ;;  %v3130_v33 = vmul.f32 %v3126_v30, %v3126_v30 }
 0xe04   : > { %3137 = vadd.xlane.f32.xlu1 %v3130_v33 }
 0xe87   : > { %v3132_v4 = vpop.xlane.xlu0 %3131 }
 0xe88   : > { %v3139_v1 = vmul.f32 0.0078125, %v3132_v4 }
 0xe89   : > { %v3134_v7 = vpop.xlane.xlu1 %3133 }
 0xe8a   : > { %v3143_v35 = vadd.f32 1e-05, %v3139_v1  ;;  %v3140_v8 = vmul.f32 0.0078125, %v3134_v7 }
 0xe8c   : > { %4225 = vrsqrt.f32 %v3143_v35  ;;  %v3144_v57 = vadd.f32 1e-05, %v3140_v8 }
 0xe8e   : > { %4227 = vrsqrt.f32 %v3144_v57 }
 0xe8f   : > { %v3136_v11 = vpop.xlane.xlu0 %3135 }
 0xe90   : > { %v3141_v12 = vmul.f32 0.0078125, %v3136_v11 }
 0xe91   : > { %v3138_v46 = vpop.xlane.xlu1 %3137 }
 0xe92   : > { %v3145_v9 = vadd.f32 1e-05, %v3141_v12  ;;  %v3142_v13 = vmul.f32 0.0078125, %v3138_v46 }
 0xe94   : > { %4229 = vrsqrt.f32 %v3145_v9  ;;  %v3146_v15 = vadd.f32 1e-05, %v3142_v13 }
 0xe96   : > { %v4226_v16 = vpop.eup %4225  ;;  %4231 = vrsqrt.f32 %v3146_v15 }
 0xe97   : > { %v3151_v59 = vmul.f32 %v4226_v16, %v3123_v63 }
 0xe98   : > { %v4228_v5 = vpop.eup %4227 }
 0xe99   : > { %v3161_v10 = vmul.f32 %v3506_v51, %v3151_v59  ;;  %v3152_v17 = vmul.f32 %v4228_v5, %v3124_v60 }
 0xe9b   : > { %v3171_v19 = vadd.f32 %v3507_v14, %v3161_v10  ;;  %v3162_v21 = vmul.f32 %v3506_v51, %v3152_v17 }
 0xe9d   : > { %3175 = vst [vmem:[%s5260_s25] sm:$0xff] %v3171_v19  ;;  %v3172_v22 = vadd.f32 %v3507_v14, %v3162_v21 }
 0xe9e   : > { %v4230_v29 = vpop.eup %4229 }
 0xe9f   : > { %3176 = vst [vmem:[%s5260_s25 + $0x8] sm:$0xff] %v3172_v22  ;;  %v3153_v18 = vmul.f32 %v4230_v29, %v3125_v3 }
 0xea0   : > { %v4232_v24 = vpop.eup %4231 }
 0xea1   : > { %v3163_v20 = vmul.f32 %v3506_v51, %v3153_v18  ;;  %v3154_v28 = vmul.f32 %v4232_v24, %v3126_v30 }
 0xea3   : > { %v3173_v31 = vadd.f32 %v3507_v14, %v3163_v20  ;;  %v3164_v26 = vmul.f32 %v3506_v51, %v3154_v28 }
 0xea5   : > { %3177 = vst [vmem:[%s5260_s25 + $0x10] sm:$0xff] %v3173_v31  ;;  %v3174_v34 = vadd.f32 %v3507_v14, %v3164_v26 }
 0xea7   : > { %3178 = vst [vmem:[%s5260_s25 + $0x18] sm:$0xff] %v3174_v34 }
 0xea8 PF: > { %s5268_s16 = sld [smem:[#allocation11_spill]]  ;;  %s5269_s29 = sld [smem:[#allocation9_spill]] }
 0xea9   : > { %s5270_s30 = sld [smem:[#allocation10_spill]]  ;;  %s5271_s15 = sld [smem:[#allocation12_spill]] }
 0xeae   : > { %p27_p3 = scmp.ge.s32.totalorder %s5268_s16, 4  }
 0xeb0   :  { %29 = sbr.rel (!%p27_p3) target bundleno = 12 (0xc), region = 159 }
 0xeb7   :  { %3190 = vsyncpa [#allocation4], 1 }
 0xeb8   :  { %3192 = vsyncpa [#allocation4 + $0x1], 1 }
 0xeb9   :  { %3193 = vsyncpa [#allocation6], 1 }
 0xeba   :  { %3195 = vsyncpa [#allocation6 + $0x1], 1 }

</bundles_post_ra>
